<compile_context>
chip_gen: v5e
topology: v5e:2x2
jax: 0.10.0
libtpu: 0.0.40
codegen_flags: <defaults>
</compile_context>

<pallas_src>
import functools

import jax
import jax.numpy as jnp
from jax import lax
from jax.experimental import pallas as pl
from jax.experimental.pallas import tpu as pltpu

EPS = 1e-5          # InstanceNorm2d eps (PyTorch default)
NEG_SLOPE = 0.01    # LeakyReLU negative_slope (nnU-Net default)
MATMUL_PRECISION = lax.Precision.HIGHEST   # pinned explicitly (review); bf16 operands are
                                           # the lower-accuracy / higher-throughput option.


def _ceil_to(x, m):
    return ((x + m - 1) // m) * m


def _stacked_kernel(nidx_ref, x_ref, *rest, H, W, KH, KW, cin0, num_convs):
    """Fused num_convs x (Conv2d 'same'/stride1/no-bias -> InstanceNorm2d -> LeakyReLU).

    nidx_ref : (1,) int32 SMEM (scalar prefetch; consumed only by the index_maps)
    x_ref    : (NB, cin0, H*W) f32   raw (unpadded) input, row-major flattened
    rest     : per conv i: w_ref (Coutp_i, KH*KW*Cinp_i), g_ref/b_ref (1, Coutp_i, 1)
               then o_ref (NB, Clastp, H*Wp), slab_scr, act_scr (VMEM scratch)
    """
    del nidx_ref
    o_ref = rest[3 * num_convs]
    slab_scr = rest[3 * num_convs + 1]    # (KH*KW*max_cin_p, H*Wp)   im2col slab
    act_scr = rest[3 * num_convs + 2]     # (max_cin_p, HWbuf)        padded staging buffer

    ph, pw = (KH - 1) // 2, (KW - 1) // 2
    Wp = W + 2 * pw               # working row pitch (left+right zero pad)
    HWv = H * Wp                  # working width: H valid rows x padded row pitch
    interior = ph * Wp + pw       # flat offset of pixel (0, 0) inside the padded buffer
    NB = x_ref.shape[0]

    # Lanes whose column index is >= W are row-pitch scratch lanes (masked out of the stats).
    col = lax.broadcasted_iota(jnp.int32, (1, HWv), 1) % Wp
    valid = col < W
    inv_hw = jnp.float32(1.0 / (H * W))

    # hoist loop-invariant parameter loads out of the sample loop
    ws, gs, bs, rows_per_conv = [], [], [], []
    for i in range(num_convs):
        w_ref = rest[3 * i]
        ws.append(w_ref[...])
        gs.append(rest[3 * i + 1][0])                      # (Coutp_i, 1)
        bs.append(rest[3 * i + 2][0])                      # (Coutp_i, 1)
        rows_per_conv.append(w_ref.shape[1] // (KH * KW))  # padded input channels of conv i

    # Zero the padded staging buffer ONCE per grid step (hoisted off the per-sample path).
    # Only rows [0, c) of the interior window are ever dirtied afterwards, so the zero
    # padding fringe stays valid for every sample of this step.  (Not gated on
    # program_id==0: scratch is per-TensorCore on megacore/v7x, so step 0 may never run
    # on the second core.)
    act_scr[...] = jnp.zeros(act_scr.shape, act_scr.dtype)

    def conv_in_lrelu(rows, w_flat, gamma, beta):
        # im2col slab: tap (dy, dx) of the zero-padded image is the flat lane window
        # [dy*Wp+dx, dy*Wp+dx + HWv) of the padded staging buffer.
        for dy in range(KH):
            for dx in range(KW):
                t = dy * KW + dx
                off = dy * Wp + dx
                slab_scr[t * rows:(t + 1) * rows, :] = act_scr[0:rows, off:off + HWv]
        slab = slab_scr[0:KH * KW * rows, :]
        # single MXU contraction per conv block, explicit precision (review)
        acc = jnp.dot(w_flat, slab, preferred_element_type=jnp.float32,
                      precision=MATMUL_PRECISION)                       # (Cout, HWv)
        # InstanceNorm2d over the H*W valid positions: single-pass sum / sum-of-squares
        accm = jnp.where(valid, acc, 0.0)
        s1 = jnp.sum(accm, axis=1, keepdims=True)
        s2 = jnp.sum(accm * accm, axis=1, keepdims=True)
        mean = s1 * inv_hw
        var = s2 * inv_hw - mean * mean          # f32 accumulation; validated vs two-pass ref
        y = (acc - mean) * lax.rsqrt(var + EPS)
        y = y * gamma + beta
        return jnp.maximum(y, NEG_SLOPE * y)     # LeakyReLU(0.01)

    def sample_body(s, carry):
        # Re-pitch the raw (cin0, H*W) sample (row pitch W) into the padded staging buffer
        # (row pitch Wp): H small stores entirely inside VMEM -- replaces the XLA-side pad.
        for r in range(H):
            dst = interior + r * Wp
            act_scr[0:cin0, dst:dst + W] = x_ref[s, :, r * W:(r + 1) * W]
        # Rows [cin0, rows_per_conv[0]) of act_scr may hold stale data from a previous
        # sample's intermediate activation; the corresponding weight columns are zero, so
        # they contribute exactly 0 to the contraction.
        y = conv_in_lrelu(rows_per_conv[0], ws[0], gs[0], bs[0])
        for i in range(1, num_convs):
            # stage the intermediate activation (already Wp-pitched) back into the padded
            # buffer: one store, pitch-scratch lanes forced to 0 to keep the padding valid.
            act_scr[0:y.shape[0], interior:interior + HWv] = jnp.where(valid, y, 0.0)
            y = conv_in_lrelu(rows_per_conv[i], ws[i], gs[i], bs[i])
        o_ref[s] = y.astype(o_ref.dtype)
        return carry

    # compact loop body for NB > 1 (instead of a fully unrolled Python loop)
    lax.fori_loop(0, NB, sample_body, 0)


def stacked_conv_blocks_separate_norm(x_nchw, params, norm_idx, *,
                                      samples_per_step=1, crop_output=True):
    """Forward of StackedConvBlocksSeparateNorm (2D, stride 1, odd 'same' kernels).

    x_nchw   : (N, Cin, H, W) f32  (PyTorch NCHW convention)
    params   : list (one per conv) of dicts:
                 'w_oihw' : (Cout_i, Cin_i, KH, KW)
                 'gammas' : (num_separate_norms, Cout_i)
                 'betas'  : (num_separate_norms, Cout_i)
    norm_idx : int (may be a traced int32 scalar; no recompile per index)
    crop_output : if False, return the pitched (N, Coutp, H*Wp) layout so a downstream
                  stacked block can consume it directly and skip its own re-pad/crop
                  (pitch lanes col>=W hold garbage and must be ignored by the consumer).
    """
    N, cin0, H, W = x_nchw.shape
    num_convs = len(params)
    cout_last = params[-1]["w_oihw"].shape[0]
    KH, KW = params[0]["w_oihw"].shape[2], params[0]["w_oihw"].shape[3]
    # TODO(synk): only the reproduced config is covered: Conv2d, stride 1, odd kernels,
    #             no conv bias, dropout_op=None, nonlin_first=False (Conv3d / strides
    #             would need a different tiling).
    ph, pw = (KH - 1) // 2, (KW - 1) // 2
    Wp = W + 2 * pw
    HWv = H * Wp
    # im2col windows of the last tap run (KW-1) lanes past Hp*Wp -> allocate that slack
    # so every flat window slice stays in bounds (fixes the previous OOB swap error).
    HWbuf = (KH - 1) * Wp + (KW - 1) + HWv

    # pad channel counts up to multiples of 8 (sublane tiling); zero weight columns make
    # the padded input channels contribute exactly 0.
    cins = [cin0] + [p["w_oihw"].shape[0] for p in params[:-1]]
    cins_p = [_ceil_to(c, 8) for c in cins]
    couts_p = [_ceil_to(p["w_oihw"].shape[0], 8) for p in params]

    nb = max(1, int(samples_per_step))
    # keep >= 2 grid steps so the single "parallel" axis spans both v7x TensorCores
    if N % nb != 0 or (N >= 2 and N // nb < 2):
        nb = 1

    # raw input, only a free contiguous reshape -- no padded copy written to HBM
    x_flat = x_nchw.reshape(N, cin0, H * W)
    nidx = jnp.asarray(norm_idx, jnp.int32).reshape((1,))

    operands = [x_flat]
    in_specs = [pl.BlockSpec((nb, cin0, H * W), lambda n, s_ref: (n, 0, 0))]
    for i, p in enumerate(params):
        cout, cin = p["w_oihw"].shape[:2]
        cout_p, cin_p = couts_p[i], cins_p[i]
        w = jnp.pad(p["w_oihw"],
                    ((0, cout_p - cout), (0, cin_p - cin), (0, 0), (0, 0)))
        # tap-major flat weight: w_flat[o, (dy*KW+dx)*cin_p + c] = w[o, c, dy, dx]
        w_flat = jnp.transpose(w, (0, 2, 3, 1)).reshape(cout_p, KH * KW * cin_p)
        gam = jnp.pad(p["gammas"], ((0, 0), (0, cout_p - cout)),
                      constant_values=1.0)[:, :, None]            # (S, cout_p, 1)
        bet = jnp.pad(p["betas"], ((0, 0), (0, cout_p - cout)))[:, :, None]
        operands += [w_flat, gam, bet]
        in_specs += [
            pl.BlockSpec((cout_p, KH * KW * cin_p), lambda n, s_ref: (0, 0)),
            pl.BlockSpec((1, cout_p, 1), lambda n, s_ref: (s_ref[0], 0, 0)),
            pl.BlockSpec((1, cout_p, 1), lambda n, s_ref: (s_ref[0], 0, 0)),
        ]

    kernel = functools.partial(_stacked_kernel, H=H, W=W, KH=KH, KW=KW,
                               cin0=cin0, num_convs=num_convs)

    out_flat = pl.pallas_call(
        kernel,
        out_shape=jax.ShapeDtypeStruct((N, couts_p[-1], HWv), jnp.float32),
        grid_spec=pltpu.PrefetchScalarGridSpec(
            num_scalar_prefetch=1,
            grid=(N // nb,),
            in_specs=in_specs,
            out_specs=pl.BlockSpec((nb, couts_p[-1], HWv),
                                   lambda n, s_ref: (n, 0, 0)),
            scratch_shapes=[
                pltpu.VMEM((KH * KW * max(cins_p), HWv), jnp.float32),   # im2col slab
                pltpu.VMEM((max(cins_p), HWbuf), jnp.float32),           # padded staging buf
            ],
        ),
        compiler_params=pltpu.CompilerParams(
            dimension_semantics=("parallel",),
            # explicit, generation-safe budget (well above actual use; fits v7x's 64 MiB)
            vmem_limit_bytes=32 * 1024 * 1024,
        ),
    )(nidx, *operands)

    if not crop_output:
        return out_flat
    # (N, Cp, H*Wp) -> (N, Cout, H, W): drop channel padding and per-row pitch lanes.
    # (Chained blocks should use crop_output=False and consume the pitched layout instead.)
    return out_flat.reshape(N, couts_p[-1], H, Wp)[:, :cout_last, :, :W]


def _reference_forward(x_nchw, params, norm_idx):
    """Plain-JAX reference (lax.conv, HIGHEST precision) for validation."""
    x = jnp.transpose(x_nchw, (0, 2, 3, 1))
    for p in params:
        cout, cin, KH, KW = p["w_oihw"].shape
        w_hwio = jnp.transpose(p["w_oihw"], (2, 3, 1, 0))
        y = lax.conv_general_dilated(
            x, w_hwio, window_strides=(1, 1),
            padding=[((KH - 1) // 2,) * 2, ((KW - 1) // 2,) * 2],
            dimension_numbers=("NHWC", "HWIO", "NHWC"),
            precision=lax.Precision.HIGHEST)
        mean = jnp.mean(y, axis=(1, 2), keepdims=True)
        var = jnp.mean((y - mean) ** 2, axis=(1, 2), keepdims=True)
        y = (y - mean) * lax.rsqrt(var + EPS)
        y = y * p["gammas"][norm_idx] + p["betas"][norm_idx]
        x = jnp.where(y > 0, y, NEG_SLOPE * y)
    return jnp.transpose(x, (0, 3, 1, 2))


def make_params(key, num_convs, input_channels, output_channels, kernel_size,
                num_separate_norms):
    """Deterministic synthetic parameters (shapes match the PyTorch module)."""
    params = []
    cin = input_channels
    for i in range(num_convs):
        cout = output_channels[i]
        key, kw_, kg_, kb_ = jax.random.split(key, 4)
        fan_in = cin * kernel_size * kernel_size
        w = jax.random.normal(kw_, (cout, cin, kernel_size, kernel_size),
                              jnp.float32) * (1.0 / fan_in) ** 0.5
        gammas = 1.0 + 0.1 * jax.random.normal(kg_, (num_separate_norms, cout),
                                               jnp.float32)
        betas = 0.1 * jax.random.normal(kb_, (num_separate_norms, cout), jnp.float32)
        params.append({"w_oihw": w, "gammas": gammas, "betas": betas})
        cin = cout
    return params


if __name__ == "__main__":
    # Module config: num_convs=2, Conv2d, Cin=4 -> Cout=8 (both convs), kernel 3,
    # stride 1, no conv bias, InstanceNorm2d(affine), LeakyReLU(0.01),
    # num_separate_norms=2, dropout_op=None.
    num_convs = 2
    input_channels = 4
    output_channels = [8, 8]
    kernel_size = 3
    num_separate_norms = 2
    norm_idx = 1

    key = jax.random.PRNGKey(0)
    key, kx = jax.random.split(key)
    x = jax.random.normal(kx, (2, input_channels, 16, 16), jnp.float32)   # NCHW

    params = make_params(key, num_convs, input_channels, output_channels,
                         kernel_size, num_separate_norms)

    fwd = jax.jit(stacked_conv_blocks_separate_norm)
    out = fwd(x, params, norm_idx)       # norm_idx is a traced scalar -> no recompiles
    out = jax.block_until_ready(out)

    ref = _reference_forward(x, params, norm_idx)
    assert out.shape == (2, output_channels[-1], 16, 16), out.shape
    err = float(jnp.max(jnp.abs(out - ref)))
    assert err < 1e-3, f"mismatch vs reference (max abs err {err})"

    print("KERNEL_OK")
</pallas_src>

<mosaic_0001>
module attributes {stable_mosaic.version = 11 : i64} {
  func.func @_stacked_kernel(%arg0: i32, %arg1: memref<1xi32, #tpu.memory_space<smem>>, %arg2: memref<1x4x256xf32, #tpu.memory_space<vmem>>, %arg3: memref<8x72xf32, #tpu.memory_space<vmem>>, %arg4: memref<1x8x1xf32, #tpu.memory_space<vmem>>, %arg5: memref<1x8x1xf32, #tpu.memory_space<vmem>>, %arg6: memref<8x72xf32, #tpu.memory_space<vmem>>, %arg7: memref<1x8x1xf32, #tpu.memory_space<vmem>>, %arg8: memref<1x8x1xf32, #tpu.memory_space<vmem>>, %arg9: memref<1x8x288xf32, #tpu.memory_space<vmem>>, %arg10: memref<72x288xf32, #tpu.memory_space<vmem>>, %arg11: memref<8x326xf32, #tpu.memory_space<vmem>>) attributes {dimension_semantics = [#tpu.dimension_semantics<parallel>], iteration_bounds = array<i64: 2>, scalar_prefetch = 1 : i64, scratch_operands = 2 : i64, tpu.core_type = #tpu.core_type<tc>, window_params = [{transform_indices = @transform_0, window_bounds = array<i64: 1, 4, 256>}, {pipeline_mode = #tpu.pipeline_mode<synchronous>, transform_indices = @transform_1, window_bounds = array<i64: 8, 72>}, {transform_indices = @transform_2, window_bounds = array<i64: 1, 8, 1>}, {transform_indices = @transform_3, window_bounds = array<i64: 1, 8, 1>}, {pipeline_mode = #tpu.pipeline_mode<synchronous>, transform_indices = @transform_4, window_bounds = array<i64: 8, 72>}, {transform_indices = @transform_5, window_bounds = array<i64: 1, 8, 1>}, {transform_indices = @transform_6, window_bounds = array<i64: 1, 8, 1>}, {transform_indices = @transform_7, window_bounds = array<i64: 1, 8, 288>}]} {
    %0 = tpu.iota {dimensions = array<i32: 1>} : vector<1x288xi32>
    %c18_i32 = arith.constant 18 : i32
    %c0_i32 = arith.constant 0 : i32
    %1 = arith.cmpi eq, %c18_i32, %c0_i32 : i32
    %c1_i32 = arith.constant 1 : i32
    %2 = arith.select %1, %c1_i32, %c18_i32 : i32
    %3 = vector.broadcast %2 : i32 to vector<1x288xi32>
    %4 = arith.remsi %0, %3 : vector<1x288xi32>
    %c0_i32_0 = arith.constant 0 : i32
    %5 = vector.broadcast %c0_i32_0 : i32 to vector<1x288xi32>
    %6 = arith.cmpi ne, %4, %5 : vector<1x288xi32>
    %c0_i32_1 = arith.constant 0 : i32
    %7 = vector.broadcast %c0_i32_1 : i32 to vector<1x288xi32>
    %8 = arith.cmpi slt, %4, %7 : vector<1x288xi32>
    %c0_i32_2 = arith.constant 0 : i32
    %9 = arith.cmpi slt, %2, %c0_i32_2 : i32
    %10 = vector.broadcast %9 : i1 to vector<1x288xi1>
    %11 = vector.broadcast %10 : vector<1x288xi1> to vector<1x288xi1>
    %12 = arith.xori %8, %11 : vector<1x288xi1>
    %13 = arith.andi %12, %6 : vector<1x288xi1>
    %14 = vector.broadcast %2 : i32 to vector<1x288xi32>
    %15 = arith.addi %4, %14 : vector<1x288xi32>
    %16 = arith.select %13, %15, %4 : vector<1x288xi1>, vector<1x288xi32>
    %c16_i32 = arith.constant 16 : i32
    %17 = vector.broadcast %c16_i32 : i32 to vector<1x288xi32>
    %18 = arith.cmpi slt, %16, %17 : vector<1x288xi32>
    %c0 = arith.constant 0 : index
    %c0_3 = arith.constant 0 : index
    %19 = vector.load %arg3[%c0, %c0_3] : memref<8x72xf32, #tpu.memory_space<vmem>>, vector<8x72xf32>
    %c0_4 = arith.constant 0 : index
    %c0_5 = arith.constant 0 : index
    %c0_6 = arith.constant 0 : index
    %20 = vector.load %arg4[%c0_4, %c0_5, %c0_6] : memref<1x8x1xf32, #tpu.memory_space<vmem>>, vector<1x8x1xf32>
    %21 = vector.shape_cast %20 : vector<1x8x1xf32> to vector<8x1xf32>
    %c0_7 = arith.constant 0 : index
    %c0_8 = arith.constant 0 : index
    %c0_9 = arith.constant 0 : index
    %22 = vector.load %arg5[%c0_7, %c0_8, %c0_9] : memref<1x8x1xf32, #tpu.memory_space<vmem>>, vector<1x8x1xf32>
    %23 = vector.shape_cast %22 : vector<1x8x1xf32> to vector<8x1xf32>
    %c0_10 = arith.constant 0 : index
    %c0_11 = arith.constant 0 : index
    %24 = vector.load %arg6[%c0_10, %c0_11] : memref<8x72xf32, #tpu.memory_space<vmem>>, vector<8x72xf32>
    %c0_12 = arith.constant 0 : index
    %c0_13 = arith.constant 0 : index
    %c0_14 = arith.constant 0 : index
    %25 = vector.load %arg7[%c0_12, %c0_13, %c0_14] : memref<1x8x1xf32, #tpu.memory_space<vmem>>, vector<1x8x1xf32>
    %26 = vector.shape_cast %25 : vector<1x8x1xf32> to vector<8x1xf32>
    %c0_15 = arith.constant 0 : index
    %c0_16 = arith.constant 0 : index
    %c0_17 = arith.constant 0 : index
    %27 = vector.load %arg8[%c0_15, %c0_16, %c0_17] : memref<1x8x1xf32, #tpu.memory_space<vmem>>, vector<1x8x1xf32>
    %28 = vector.shape_cast %27 : vector<1x8x1xf32> to vector<8x1xf32>
    %cst = arith.constant 0.000000e+00 : f32
    %29 = vector.broadcast %cst : f32 to vector<8x326xf32>
    %c0_18 = arith.constant 0 : index
    %c0_19 = arith.constant 0 : index
    %30 = vector.load %arg11[%c0_18, %c0_19] : memref<8x326xf32, #tpu.memory_space<vmem>>, vector<8x326xf32>
    tpu.vector_store %arg11[%c0_18, %c0_19], %29 {strides = array<i32>} : memref<8x326xf32, #tpu.memory_space<vmem>>, vector<8x326xf32>,
    %cst_20 = arith.constant 3.906250e-03 : f32
    %c0_i32_21 = arith.constant 0 : i32
    %31 = arith.index_cast %c0_i32_21 : i32 to index
    %c0_22 = arith.constant 0 : index
    %c0_23 = arith.constant 0 : index
    %32 = vector.load %arg2[%31, %c0_22, %c0_23] : memref<1x4x256xf32, #tpu.memory_space<vmem>>, vector<1x4x16xf32>
    %33 = vector.shape_cast %32 : vector<1x4x16xf32> to vector<4x16xf32>
    %c0_24 = arith.constant 0 : index
    %c19 = arith.constant 19 : index
    %34 = vector.load %arg11[%c0_24, %c19] : memref<8x326xf32, #tpu.memory_space<vmem>>, vector<4x16xf32>
    tpu.vector_store %arg11[%c0_24, %c19], %33 {strides = array<i32>} : memref<8x326xf32, #tpu.memory_space<vmem>>, vector<4x16xf32>,
    %35 = arith.index_cast %c0_i32_21 : i32 to index
    %c0_25 = arith.constant 0 : index
    %c16 = arith.constant 16 : index
    %36 = vector.load %arg2[%35, %c0_25, %c16] : memref<1x4x256xf32, #tpu.memory_space<vmem>>, vector<1x4x16xf32>
    %37 = vector.shape_cast %36 : vector<1x4x16xf32> to vector<4x16xf32>
    %c0_26 = arith.constant 0 : index
    %c37 = arith.constant 37 : index
    %38 = vector.load %arg11[%c0_26, %c37] : memref<8x326xf32, #tpu.memory_space<vmem>>, vector<4x16xf32>
    tpu.vector_store %arg11[%c0_26, %c37], %37 {strides = array<i32>} : memref<8x326xf32, #tpu.memory_space<vmem>>, vector<4x16xf32>,
    %39 = arith.index_cast %c0_i32_21 : i32 to index
    %c0_27 = arith.constant 0 : index
    %c32 = arith.constant 32 : index
    %40 = vector.load %arg2[%39, %c0_27, %c32] : memref<1x4x256xf32, #tpu.memory_space<vmem>>, vector<1x4x16xf32>
    %41 = vector.shape_cast %40 : vector<1x4x16xf32> to vector<4x16xf32>
    %c0_28 = arith.constant 0 : index
    %c55 = arith.constant 55 : index
    %42 = vector.load %arg11[%c0_28, %c55] : memref<8x326xf32, #tpu.memory_space<vmem>>, vector<4x16xf32>
    tpu.vector_store %arg11[%c0_28, %c55], %41 {strides = array<i32>} : memref<8x326xf32, #tpu.memory_space<vmem>>, vector<4x16xf32>,
    %43 = arith.index_cast %c0_i32_21 : i32 to index
    %c0_29 = arith.constant 0 : index
    %c48 = arith.constant 48 : index
    %44 = vector.load %arg2[%43, %c0_29, %c48] : memref<1x4x256xf32, #tpu.memory_space<vmem>>, vector<1x4x16xf32>
    %45 = vector.shape_cast %44 : vector<1x4x16xf32> to vector<4x16xf32>
    %c0_30 = arith.constant 0 : index
    %c73 = arith.constant 73 : index
    %46 = vector.load %arg11[%c0_30, %c73] : memref<8x326xf32, #tpu.memory_space<vmem>>, vector<4x16xf32>
    tpu.vector_store %arg11[%c0_30, %c73], %45 {strides = array<i32>} : memref<8x326xf32, #tpu.memory_space<vmem>>, vector<4x16xf32>,
    %47 = arith.index_cast %c0_i32_21 : i32 to index
    %c0_31 = arith.constant 0 : index
    %c64 = arith.constant 64 : index
    %48 = vector.load %arg2[%47, %c0_31, %c64] : memref<1x4x256xf32, #tpu.memory_space<vmem>>, vector<1x4x16xf32>
    %49 = vector.shape_cast %48 : vector<1x4x16xf32> to vector<4x16xf32>
    %c0_32 = arith.constant 0 : index
    %c91 = arith.constant 91 : index
    %50 = vector.load %arg11[%c0_32, %c91] : memref<8x326xf32, #tpu.memory_space<vmem>>, vector<4x16xf32>
    tpu.vector_store %arg11[%c0_32, %c91], %49 {strides = array<i32>} : memref<8x326xf32, #tpu.memory_space<vmem>>, vector<4x16xf32>,
    %51 = arith.index_cast %c0_i32_21 : i32 to index
    %c0_33 = arith.constant 0 : index
    %c80 = arith.constant 80 : index
    %52 = vector.load %arg2[%51, %c0_33, %c80] : memref<1x4x256xf32, #tpu.memory_space<vmem>>, vector<1x4x16xf32>
    %53 = vector.shape_cast %52 : vector<1x4x16xf32> to vector<4x16xf32>
    %c0_34 = arith.constant 0 : index
    %c109 = arith.constant 109 : index
    %54 = vector.load %arg11[%c0_34, %c109] : memref<8x326xf32, #tpu.memory_space<vmem>>, vector<4x16xf32>
    tpu.vector_store %arg11[%c0_34, %c109], %53 {strides = array<i32>} : memref<8x326xf32, #tpu.memory_space<vmem>>, vector<4x16xf32>,
    %55 = arith.index_cast %c0_i32_21 : i32 to index
    %c0_35 = arith.constant 0 : index
    %c96 = arith.constant 96 : index
    %56 = vector.load %arg2[%55, %c0_35, %c96] : memref<1x4x256xf32, #tpu.memory_space<vmem>>, vector<1x4x16xf32>
    %57 = vector.shape_cast %56 : vector<1x4x16xf32> to vector<4x16xf32>
    %c0_36 = arith.constant 0 : index
    %c127 = arith.constant 127 : index
    %58 = vector.load %arg11[%c0_36, %c127] : memref<8x326xf32, #tpu.memory_space<vmem>>, vector<4x16xf32>
    tpu.vector_store %arg11[%c0_36, %c127], %57 {strides = array<i32>} : memref<8x326xf32, #tpu.memory_space<vmem>>, vector<4x16xf32>,
    %59 = arith.index_cast %c0_i32_21 : i32 to index
    %c0_37 = arith.constant 0 : index
    %c112 = arith.constant 112 : index
    %60 = vector.load %arg2[%59, %c0_37, %c112] : memref<1x4x256xf32, #tpu.memory_space<vmem>>, vector<1x4x16xf32>
    %61 = vector.shape_cast %60 : vector<1x4x16xf32> to vector<4x16xf32>
    %c0_38 = arith.constant 0 : index
    %c145 = arith.constant 145 : index
    %62 = vector.load %arg11[%c0_38, %c145] : memref<8x326xf32, #tpu.memory_space<vmem>>, vector<4x16xf32>
    tpu.vector_store %arg11[%c0_38, %c145], %61 {strides = array<i32>} : memref<8x326xf32, #tpu.memory_space<vmem>>, vector<4x16xf32>,
    %63 = arith.index_cast %c0_i32_21 : i32 to index
    %c0_39 = arith.constant 0 : index
    %c128 = arith.constant 128 : index
    %64 = vector.load %arg2[%63, %c0_39, %c128] : memref<1x4x256xf32, #tpu.memory_space<vmem>>, vector<1x4x16xf32>
    %65 = vector.shape_cast %64 : vector<1x4x16xf32> to vector<4x16xf32>
    %c0_40 = arith.constant 0 : index
    %c163 = arith.constant 163 : index
    %66 = vector.load %arg11[%c0_40, %c163] : memref<8x326xf32, #tpu.memory_space<vmem>>, vector<4x16xf32>
    tpu.vector_store %arg11[%c0_40, %c163], %65 {strides = array<i32>} : memref<8x326xf32, #tpu.memory_space<vmem>>, vector<4x16xf32>,
    %67 = arith.index_cast %c0_i32_21 : i32 to index
    %c0_41 = arith.constant 0 : index
    %c144 = arith.constant 144 : index
    %68 = vector.load %arg2[%67, %c0_41, %c144] : memref<1x4x256xf32, #tpu.memory_space<vmem>>, vector<1x4x16xf32>
    %69 = vector.shape_cast %68 : vector<1x4x16xf32> to vector<4x16xf32>
    %c0_42 = arith.constant 0 : index
    %c181 = arith.constant 181 : index
    %70 = vector.load %arg11[%c0_42, %c181] : memref<8x326xf32, #tpu.memory_space<vmem>>, vector<4x16xf32>
    tpu.vector_store %arg11[%c0_42, %c181], %69 {strides = array<i32>} : memref<8x326xf32, #tpu.memory_space<vmem>>, vector<4x16xf32>,
    %71 = arith.index_cast %c0_i32_21 : i32 to index
    %c0_43 = arith.constant 0 : index
    %c160 = arith.constant 160 : index
    %72 = vector.load %arg2[%71, %c0_43, %c160] : memref<1x4x256xf32, #tpu.memory_space<vmem>>, vector<1x4x16xf32>
    %73 = vector.shape_cast %72 : vector<1x4x16xf32> to vector<4x16xf32>
    %c0_44 = arith.constant 0 : index
    %c199 = arith.constant 199 : index
    %74 = vector.load %arg11[%c0_44, %c199] : memref<8x326xf32, #tpu.memory_space<vmem>>, vector<4x16xf32>
    tpu.vector_store %arg11[%c0_44, %c199], %73 {strides = array<i32>} : memref<8x326xf32, #tpu.memory_space<vmem>>, vector<4x16xf32>,
    %75 = arith.index_cast %c0_i32_21 : i32 to index
    %c0_45 = arith.constant 0 : index
    %c176 = arith.constant 176 : index
    %76 = vector.load %arg2[%75, %c0_45, %c176] : memref<1x4x256xf32, #tpu.memory_space<vmem>>, vector<1x4x16xf32>
    %77 = vector.shape_cast %76 : vector<1x4x16xf32> to vector<4x16xf32>
    %c0_46 = arith.constant 0 : index
    %c217 = arith.constant 217 : index
    %78 = vector.load %arg11[%c0_46, %c217] : memref<8x326xf32, #tpu.memory_space<vmem>>, vector<4x16xf32>
    tpu.vector_store %arg11[%c0_46, %c217], %77 {strides = array<i32>} : memref<8x326xf32, #tpu.memory_space<vmem>>, vector<4x16xf32>,
    %79 = arith.index_cast %c0_i32_21 : i32 to index
    %c0_47 = arith.constant 0 : index
    %c192 = arith.constant 192 : index
    %80 = vector.load %arg2[%79, %c0_47, %c192] : memref<1x4x256xf32, #tpu.memory_space<vmem>>, vector<1x4x16xf32>
    %81 = vector.shape_cast %80 : vector<1x4x16xf32> to vector<4x16xf32>
    %c0_48 = arith.constant 0 : index
    %c235 = arith.constant 235 : index
    %82 = vector.load %arg11[%c0_48, %c235] : memref<8x326xf32, #tpu.memory_space<vmem>>, vector<4x16xf32>
    tpu.vector_store %arg11[%c0_48, %c235], %81 {strides = array<i32>} : memref<8x326xf32, #tpu.memory_space<vmem>>, vector<4x16xf32>,
    %83 = arith.index_cast %c0_i32_21 : i32 to index
    %c0_49 = arith.constant 0 : index
    %c208 = arith.constant 208 : index
    %84 = vector.load %arg2[%83, %c0_49, %c208] : memref<1x4x256xf32, #tpu.memory_space<vmem>>, vector<1x4x16xf32>
    %85 = vector.shape_cast %84 : vector<1x4x16xf32> to vector<4x16xf32>
    %c0_50 = arith.constant 0 : index
    %c253 = arith.constant 253 : index
    %86 = vector.load %arg11[%c0_50, %c253] : memref<8x326xf32, #tpu.memory_space<vmem>>, vector<4x16xf32>
    tpu.vector_store %arg11[%c0_50, %c253], %85 {strides = array<i32>} : memref<8x326xf32, #tpu.memory_space<vmem>>, vector<4x16xf32>,
    %87 = arith.index_cast %c0_i32_21 : i32 to index
    %c0_51 = arith.constant 0 : index
    %c224 = arith.constant 224 : index
    %88 = vector.load %arg2[%87, %c0_51, %c224] : memref<1x4x256xf32, #tpu.memory_space<vmem>>, vector<1x4x16xf32>
    %89 = vector.shape_cast %88 : vector<1x4x16xf32> to vector<4x16xf32>
    %c0_52 = arith.constant 0 : index
    %c271 = arith.constant 271 : index
    %90 = vector.load %arg11[%c0_52, %c271] : memref<8x326xf32, #tpu.memory_space<vmem>>, vector<4x16xf32>
    tpu.vector_store %arg11[%c0_52, %c271], %89 {strides = array<i32>} : memref<8x326xf32, #tpu.memory_space<vmem>>, vector<4x16xf32>,
    %91 = arith.index_cast %c0_i32_21 : i32 to index
    %c0_53 = arith.constant 0 : index
    %c240 = arith.constant 240 : index
    %92 = vector.load %arg2[%91, %c0_53, %c240] : memref<1x4x256xf32, #tpu.memory_space<vmem>>, vector<1x4x16xf32>
    %93 = vector.shape_cast %92 : vector<1x4x16xf32> to vector<4x16xf32>
    %c0_54 = arith.constant 0 : index
    %c289 = arith.constant 289 : index
    %94 = vector.load %arg11[%c0_54, %c289] : memref<8x326xf32, #tpu.memory_space<vmem>>, vector<4x16xf32>
    tpu.vector_store %arg11[%c0_54, %c289], %93 {strides = array<i32>} : memref<8x326xf32, #tpu.memory_space<vmem>>, vector<4x16xf32>,
    %c0_55 = arith.constant 0 : index
    %c0_56 = arith.constant 0 : index
    %95 = vector.load %arg11[%c0_55, %c0_56] : memref<8x326xf32, #tpu.memory_space<vmem>>, vector<8x288xf32>
    %c0_57 = arith.constant 0 : index
    %c0_58 = arith.constant 0 : index
    %96 = vector.load %arg10[%c0_57, %c0_58] : memref<72x288xf32, #tpu.memory_space<vmem>>, vector<8x288xf32>
    tpu.vector_store %arg10[%c0_57, %c0_58], %95 {strides = array<i32>} : memref<72x288xf32, #tpu.memory_space<vmem>>, vector<8x288xf32>,
    %c0_59 = arith.constant 0 : index
    %c1 = arith.constant 1 : index
    %97 = vector.load %arg11[%c0_59, %c1] : memref<8x326xf32, #tpu.memory_space<vmem>>, vector<8x288xf32>
    %c8 = arith.constant 8 : index
    %c0_60 = arith.constant 0 : index
    %98 = vector.load %arg10[%c8, %c0_60] : memref<72x288xf32, #tpu.memory_space<vmem>>, vector<8x288xf32>
    tpu.vector_store %arg10[%c8, %c0_60], %97 {strides = array<i32>} : memref<72x288xf32, #tpu.memory_space<vmem>>, vector<8x288xf32>,
    %c0_61 = arith.constant 0 : index
    %c2 = arith.constant 2 : index
    %99 = vector.load %arg11[%c0_61, %c2] : memref<8x326xf32, #tpu.memory_space<vmem>>, vector<8x288xf32>
    %c16_62 = arith.constant 16 : index
    %c0_63 = arith.constant 0 : index
    %100 = vector.load %arg10[%c16_62, %c0_63] : memref<72x288xf32, #tpu.memory_space<vmem>>, vector<8x288xf32>
    tpu.vector_store %arg10[%c16_62, %c0_63], %99 {strides = array<i32>} : memref<72x288xf32, #tpu.memory_space<vmem>>, vector<8x288xf32>,
    %c0_64 = arith.constant 0 : index
    %c18 = arith.constant 18 : index
    %101 = vector.load %arg11[%c0_64, %c18] : memref<8x326xf32, #tpu.memory_space<vmem>>, vector<8x288xf32>
    %c24 = arith.constant 24 : index
    %c0_65 = arith.constant 0 : index
    %102 = vector.load %arg10[%c24, %c0_65] : memref<72x288xf32, #tpu.memory_space<vmem>>, vector<8x288xf32>
    tpu.vector_store %arg10[%c24, %c0_65], %101 {strides = array<i32>} : memref<72x288xf32, #tpu.memory_space<vmem>>, vector<8x288xf32>,
    %c0_66 = arith.constant 0 : index
    %c19_67 = arith.constant 19 : index
    %103 = vector.load %arg11[%c0_66, %c19_67] : memref<8x326xf32, #tpu.memory_space<vmem>>, vector<8x288xf32>
    %c32_68 = arith.constant 32 : index
    %c0_69 = arith.constant 0 : index
    %104 = vector.load %arg10[%c32_68, %c0_69] : memref<72x288xf32, #tpu.memory_space<vmem>>, vector<8x288xf32>
    tpu.vector_store %arg10[%c32_68, %c0_69], %103 {strides = array<i32>} : memref<72x288xf32, #tpu.memory_space<vmem>>, vector<8x288xf32>,
    %c0_70 = arith.constant 0 : index
    %c20 = arith.constant 20 : index
    %105 = vector.load %arg11[%c0_70, %c20] : memref<8x326xf32, #tpu.memory_space<vmem>>, vector<8x288xf32>
    %c40 = arith.constant 40 : index
    %c0_71 = arith.constant 0 : index
    %106 = vector.load %arg10[%c40, %c0_71] : memref<72x288xf32, #tpu.memory_space<vmem>>, vector<8x288xf32>
    tpu.vector_store %arg10[%c40, %c0_71], %105 {strides = array<i32>} : memref<72x288xf32, #tpu.memory_space<vmem>>, vector<8x288xf32>,
    %c0_72 = arith.constant 0 : index
    %c36 = arith.constant 36 : index
    %107 = vector.load %arg11[%c0_72, %c36] : memref<8x326xf32, #tpu.memory_space<vmem>>, vector<8x288xf32>
    %c48_73 = arith.constant 48 : index
    %c0_74 = arith.constant 0 : index
    %108 = vector.load %arg10[%c48_73, %c0_74] : memref<72x288xf32, #tpu.memory_space<vmem>>, vector<8x288xf32>
    tpu.vector_store %arg10[%c48_73, %c0_74], %107 {strides = array<i32>} : memref<72x288xf32, #tpu.memory_space<vmem>>, vector<8x288xf32>,
    %c0_75 = arith.constant 0 : index
    %c37_76 = arith.constant 37 : index
    %109 = vector.load %arg11[%c0_75, %c37_76] : memref<8x326xf32, #tpu.memory_space<vmem>>, vector<8x288xf32>
    %c56 = arith.constant 56 : index
    %c0_77 = arith.constant 0 : index
    %110 = vector.load %arg10[%c56, %c0_77] : memref<72x288xf32, #tpu.memory_space<vmem>>, vector<8x288xf32>
    tpu.vector_store %arg10[%c56, %c0_77], %109 {strides = array<i32>} : memref<72x288xf32, #tpu.memory_space<vmem>>, vector<8x288xf32>,
    %c0_78 = arith.constant 0 : index
    %c38 = arith.constant 38 : index
    %111 = vector.load %arg11[%c0_78, %c38] : memref<8x326xf32, #tpu.memory_space<vmem>>, vector<8x288xf32>
    %c64_79 = arith.constant 64 : index
    %c0_80 = arith.constant 0 : index
    %112 = vector.load %arg10[%c64_79, %c0_80] : memref<72x288xf32, #tpu.memory_space<vmem>>, vector<8x288xf32>
    tpu.vector_store %arg10[%c64_79, %c0_80], %111 {strides = array<i32>} : memref<72x288xf32, #tpu.memory_space<vmem>>, vector<8x288xf32>,
    %c0_81 = arith.constant 0 : index
    %c0_82 = arith.constant 0 : index
    %113 = vector.load %arg10[%c0_81, %c0_82] : memref<72x288xf32, #tpu.memory_space<vmem>>, vector<72x288xf32>
    %cst_83 = arith.constant dense<0.000000e+00> : vector<8x288xf32>
    %114 = tpu.matmul %19, %113, %cst_83 {dimension_numbers = #tpu.dot_dimension_numbers<[1], [0], [0], [1], [0, 0, 1, 1], [], []>, precision = #tpu.contract_precision<fp32>} : vector<8x72xf32>, vector<72x288xf32>, vector<8x288xf32> -> vector<8x288xf32>
    %cst_84 = arith.constant 0.000000e+00 : f32
    %115 = vector.shape_cast %18 : vector<1x288xi1> to vector<1x288xi1>
    %116 = vector.broadcast %115 : vector<1x288xi1> to vector<8x288xi1>
    %117 = vector.broadcast %cst_84 : f32 to vector<8x288xf32>
    %118 = arith.select %116, %114, %117 : vector<8x288xi1>, vector<8x288xf32>
    %cst_85 = arith.constant dense<0.000000e+00> : vector<8xf32>
    %119 = vector.multi_reduction <add>, %118, %cst_85 [1] : vector<8x288xf32> to vector<8xf32>
    %120 = vector.shape_cast %119 : vector<8xf32> to vector<8x1xf32>
    %121 = arith.mulf %118, %118 : vector<8x288xf32>
    %cst_86 = arith.constant dense<0.000000e+00> : vector<8xf32>
    %122 = vector.multi_reduction <add>, %121, %cst_86 [1] : vector<8x288xf32> to vector<8xf32>
    %123 = vector.shape_cast %122 : vector<8xf32> to vector<8x1xf32>
    %124 = vector.broadcast %cst_20 : f32 to vector<8x1xf32>
    %125 = arith.mulf %120, %124 : vector<8x1xf32>
    %126 = vector.broadcast %cst_20 : f32 to vector<8x1xf32>
    %127 = arith.mulf %123, %126 : vector<8x1xf32>
    %128 = arith.mulf %125, %125 : vector<8x1xf32>
    %129 = arith.subf %127, %128 : vector<8x1xf32>
    %130 = vector.broadcast %125 : vector<8x1xf32> to vector<8x288xf32>
    %131 = arith.subf %114, %130 : vector<8x288xf32>
    %cst_87 = arith.constant 9.99999974E-6 : f32
    %132 = vector.broadcast %cst_87 : f32 to vector<8x1xf32>
    %133 = arith.addf %129, %132 : vector<8x1xf32>
    %134 = math.rsqrt %133 : vector<8x1xf32>
    %135 = vector.broadcast %134 : vector<8x1xf32> to vector<8x288xf32>
    %136 = arith.mulf %131, %135 : vector<8x288xf32>
    %137 = vector.broadcast %21 : vector<8x1xf32> to vector<8x288xf32>
    %138 = arith.mulf %136, %137 : vector<8x288xf32>
    %139 = vector.broadcast %23 : vector<8x1xf32> to vector<8x288xf32>
    %140 = arith.addf %138, %139 : vector<8x288xf32>
    %cst_88 = arith.constant 0.00999999977 : f32
    %141 = vector.broadcast %cst_88 : f32 to vector<8x288xf32>
    %142 = arith.mulf %141, %140 : vector<8x288xf32>
    %143 = arith.maximumf %140, %142 : vector<8x288xf32>
    %cst_89 = arith.constant 0.000000e+00 : f32
    %144 = vector.shape_cast %18 : vector<1x288xi1> to vector<1x288xi1>
    %145 = vector.broadcast %144 : vector<1x288xi1> to vector<8x288xi1>
    %146 = vector.broadcast %cst_89 : f32 to vector<8x288xf32>
    %147 = arith.select %145, %143, %146 : vector<8x288xi1>, vector<8x288xf32>
    %c0_90 = arith.constant 0 : index
    %c19_91 = arith.constant 19 : index
    %148 = vector.load %arg11[%c0_90, %c19_91] : memref<8x326xf32, #tpu.memory_space<vmem>>, vector<8x288xf32>
    tpu.vector_store %arg11[%c0_90, %c19_91], %147 {strides = array<i32>} : memref<8x326xf32, #tpu.memory_space<vmem>>, vector<8x288xf32>,
    %c0_92 = arith.constant 0 : index
    %c0_93 = arith.constant 0 : index
    %149 = vector.load %arg11[%c0_92, %c0_93] : memref<8x326xf32, #tpu.memory_space<vmem>>, vector<8x288xf32>
    %c0_94 = arith.constant 0 : index
    %c0_95 = arith.constant 0 : index
    %150 = vector.load %arg10[%c0_94, %c0_95] : memref<72x288xf32, #tpu.memory_space<vmem>>, vector<8x288xf32>
    tpu.vector_store %arg10[%c0_94, %c0_95], %149 {strides = array<i32>} : memref<72x288xf32, #tpu.memory_space<vmem>>, vector<8x288xf32>,
    %c0_96 = arith.constant 0 : index
    %c1_97 = arith.constant 1 : index
    %151 = vector.load %arg11[%c0_96, %c1_97] : memref<8x326xf32, #tpu.memory_space<vmem>>, vector<8x288xf32>
    %c8_98 = arith.constant 8 : index
    %c0_99 = arith.constant 0 : index
    %152 = vector.load %arg10[%c8_98, %c0_99] : memref<72x288xf32, #tpu.memory_space<vmem>>, vector<8x288xf32>
    tpu.vector_store %arg10[%c8_98, %c0_99], %151 {strides = array<i32>} : memref<72x288xf32, #tpu.memory_space<vmem>>, vector<8x288xf32>,
    %c0_100 = arith.constant 0 : index
    %c2_101 = arith.constant 2 : index
    %153 = vector.load %arg11[%c0_100, %c2_101] : memref<8x326xf32, #tpu.memory_space<vmem>>, vector<8x288xf32>
    %c16_102 = arith.constant 16 : index
    %c0_103 = arith.constant 0 : index
    %154 = vector.load %arg10[%c16_102, %c0_103] : memref<72x288xf32, #tpu.memory_space<vmem>>, vector<8x288xf32>
    tpu.vector_store %arg10[%c16_102, %c0_103], %153 {strides = array<i32>} : memref<72x288xf32, #tpu.memory_space<vmem>>, vector<8x288xf32>,
    %c0_104 = arith.constant 0 : index
    %c18_105 = arith.constant 18 : index
    %155 = vector.load %arg11[%c0_104, %c18_105] : memref<8x326xf32, #tpu.memory_space<vmem>>, vector<8x288xf32>
    %c24_106 = arith.constant 24 : index
    %c0_107 = arith.constant 0 : index
    %156 = vector.load %arg10[%c24_106, %c0_107] : memref<72x288xf32, #tpu.memory_space<vmem>>, vector<8x288xf32>
    tpu.vector_store %arg10[%c24_106, %c0_107], %155 {strides = array<i32>} : memref<72x288xf32, #tpu.memory_space<vmem>>, vector<8x288xf32>,
    %c0_108 = arith.constant 0 : index
    %c19_109 = arith.constant 19 : index
    %157 = vector.load %arg11[%c0_108, %c19_109] : memref<8x326xf32, #tpu.memory_space<vmem>>, vector<8x288xf32>
    %c32_110 = arith.constant 32 : index
    %c0_111 = arith.constant 0 : index
    %158 = vector.load %arg10[%c32_110, %c0_111] : memref<72x288xf32, #tpu.memory_space<vmem>>, vector<8x288xf32>
    tpu.vector_store %arg10[%c32_110, %c0_111], %157 {strides = array<i32>} : memref<72x288xf32, #tpu.memory_space<vmem>>, vector<8x288xf32>,
    %c0_112 = arith.constant 0 : index
    %c20_113 = arith.constant 20 : index
    %159 = vector.load %arg11[%c0_112, %c20_113] : memref<8x326xf32, #tpu.memory_space<vmem>>, vector<8x288xf32>
    %c40_114 = arith.constant 40 : index
    %c0_115 = arith.constant 0 : index
    %160 = vector.load %arg10[%c40_114, %c0_115] : memref<72x288xf32, #tpu.memory_space<vmem>>, vector<8x288xf32>
    tpu.vector_store %arg10[%c40_114, %c0_115], %159 {strides = array<i32>} : memref<72x288xf32, #tpu.memory_space<vmem>>, vector<8x288xf32>,
    %c0_116 = arith.constant 0 : index
    %c36_117 = arith.constant 36 : index
    %161 = vector.load %arg11[%c0_116, %c36_117] : memref<8x326xf32, #tpu.memory_space<vmem>>, vector<8x288xf32>
    %c48_118 = arith.constant 48 : index
    %c0_119 = arith.constant 0 : index
    %162 = vector.load %arg10[%c48_118, %c0_119] : memref<72x288xf32, #tpu.memory_space<vmem>>, vector<8x288xf32>
    tpu.vector_store %arg10[%c48_118, %c0_119], %161 {strides = array<i32>} : memref<72x288xf32, #tpu.memory_space<vmem>>, vector<8x288xf32>,
    %c0_120 = arith.constant 0 : index
    %c37_121 = arith.constant 37 : index
    %163 = vector.load %arg11[%c0_120, %c37_121] : memref<8x326xf32, #tpu.memory_space<vmem>>, vector<8x288xf32>
    %c56_122 = arith.constant 56 : index
    %c0_123 = arith.constant 0 : index
    %164 = vector.load %arg10[%c56_122, %c0_123] : memref<72x288xf32, #tpu.memory_space<vmem>>, vector<8x288xf32>
    tpu.vector_store %arg10[%c56_122, %c0_123], %163 {strides = array<i32>} : memref<72x288xf32, #tpu.memory_space<vmem>>, vector<8x288xf32>,
    %c0_124 = arith.constant 0 : index
    %c38_125 = arith.constant 38 : index
    %165 = vector.load %arg11[%c0_124, %c38_125] : memref<8x326xf32, #tpu.memory_space<vmem>>, vector<8x288xf32>
    %c64_126 = arith.constant 64 : index
    %c0_127 = arith.constant 0 : index
    %166 = vector.load %arg10[%c64_126, %c0_127] : memref<72x288xf32, #tpu.memory_space<vmem>>, vector<8x288xf32>
    tpu.vector_store %arg10[%c64_126, %c0_127], %165 {strides = array<i32>} : memref<72x288xf32, #tpu.memory_space<vmem>>, vector<8x288xf32>,
    %c0_128 = arith.constant 0 : index
    %c0_129 = arith.constant 0 : index
    %167 = vector.load %arg10[%c0_128, %c0_129] : memref<72x288xf32, #tpu.memory_space<vmem>>, vector<72x288xf32>
    %cst_130 = arith.constant dense<0.000000e+00> : vector<8x288xf32>
    %168 = tpu.matmul %24, %167, %cst_130 {dimension_numbers = #tpu.dot_dimension_numbers<[1], [0], [0], [1], [0, 0, 1, 1], [], []>, precision = #tpu.contract_precision<fp32>} : vector<8x72xf32>, vector<72x288xf32>, vector<8x288xf32> -> vector<8x288xf32>
    %cst_131 = arith.constant 0.000000e+00 : f32
    %169 = vector.shape_cast %18 : vector<1x288xi1> to vector<1x288xi1>
    %170 = vector.broadcast %169 : vector<1x288xi1> to vector<8x288xi1>
    %171 = vector.broadcast %cst_131 : f32 to vector<8x288xf32>
    %172 = arith.select %170, %168, %171 : vector<8x288xi1>, vector<8x288xf32>
    %cst_132 = arith.constant dense<0.000000e+00> : vector<8xf32>
    %173 = vector.multi_reduction <add>, %172, %cst_132 [1] : vector<8x288xf32> to vector<8xf32>
    %174 = vector.shape_cast %173 : vector<8xf32> to vector<8x1xf32>
    %175 = arith.mulf %172, %172 : vector<8x288xf32>
    %cst_133 = arith.constant dense<0.000000e+00> : vector<8xf32>
    %176 = vector.multi_reduction <add>, %175, %cst_133 [1] : vector<8x288xf32> to vector<8xf32>
    %177 = vector.shape_cast %176 : vector<8xf32> to vector<8x1xf32>
    %178 = vector.broadcast %cst_20 : f32 to vector<8x1xf32>
    %179 = arith.mulf %174, %178 : vector<8x1xf32>
    %180 = vector.broadcast %cst_20 : f32 to vector<8x1xf32>
    %181 = arith.mulf %177, %180 : vector<8x1xf32>
    %182 = arith.mulf %179, %179 : vector<8x1xf32>
    %183 = arith.subf %181, %182 : vector<8x1xf32>
    %184 = vector.broadcast %179 : vector<8x1xf32> to vector<8x288xf32>
    %185 = arith.subf %168, %184 : vector<8x288xf32>
    %cst_134 = arith.constant 9.99999974E-6 : f32
    %186 = vector.broadcast %cst_134 : f32 to vector<8x1xf32>
    %187 = arith.addf %183, %186 : vector<8x1xf32>
    %188 = math.rsqrt %187 : vector<8x1xf32>
    %189 = vector.broadcast %188 : vector<8x1xf32> to vector<8x288xf32>
    %190 = arith.mulf %185, %189 : vector<8x288xf32>
    %191 = vector.broadcast %26 : vector<8x1xf32> to vector<8x288xf32>
    %192 = arith.mulf %190, %191 : vector<8x288xf32>
    %193 = vector.broadcast %28 : vector<8x1xf32> to vector<8x288xf32>
    %194 = arith.addf %192, %193 : vector<8x288xf32>
    %cst_135 = arith.constant 0.00999999977 : f32
    %195 = vector.broadcast %cst_135 : f32 to vector<8x288xf32>
    %196 = arith.mulf %195, %194 : vector<8x288xf32>
    %197 = arith.maximumf %194, %196 : vector<8x288xf32>
    %198 = arith.index_cast %c0_i32_21 : i32 to index
    %c0_136 = arith.constant 0 : index
    %c0_137 = arith.constant 0 : index
    %199 = vector.load %arg9[%198, %c0_136, %c0_137] : memref<1x8x288xf32, #tpu.memory_space<vmem>>, vector<1x8x288xf32>
    %200 = vector.shape_cast %199 : vector<1x8x288xf32> to vector<8x288xf32>
    %201 = vector.shape_cast %197 : vector<8x288xf32> to vector<1x8x288xf32>
    tpu.vector_store %arg9[%198, %c0_136, %c0_137], %201 {strides = array<i32>} : memref<1x8x288xf32, #tpu.memory_space<vmem>>, vector<1x8x288xf32>,
    %c1_i32_138 = arith.constant 1 : i32
    return
  }
  func.func @transform_0(%arg0: i32, %arg1: memref<1xi32, #tpu.memory_space<smem>>) -> (i32, i32, i32) {
    %c0_i32 = arith.constant 0 : i32
    %c0_i32_0 = arith.constant 0 : i32
    %c0_i32_1 = arith.constant 0 : i32
    return %arg0, %c0_i32, %c0_i32_0 : i32, i32, i32
  }
  func.func @transform_1(%arg0: i32, %arg1: memref<1xi32, #tpu.memory_space<smem>>) -> (i32, i32) {
    %c0_i32 = arith.constant 0 : i32
    %c0_i32_0 = arith.constant 0 : i32
    %c0_i32_1 = arith.constant 0 : i32
    return %c0_i32, %c0_i32_0 : i32, i32
  }
  func.func @transform_2(%arg0: i32, %arg1: memref<1xi32, #tpu.memory_space<smem>>) -> (i32, i32, i32) {
    %c0 = arith.constant 0 : index
    %0 = memref.load %arg1[%c0] : memref<1xi32, #tpu.memory_space<smem>>
    %c0_i32 = arith.constant 0 : i32
    %c0_i32_0 = arith.constant 0 : i32
    %c0_i32_1 = arith.constant 0 : i32
    return %0, %c0_i32, %c0_i32_0 : i32, i32, i32
  }
  func.func @transform_3(%arg0: i32, %arg1: memref<1xi32, #tpu.memory_space<smem>>) -> (i32, i32, i32) {
    %c0 = arith.constant 0 : index
    %0 = memref.load %arg1[%c0] : memref<1xi32, #tpu.memory_space<smem>>
    %c0_i32 = arith.constant 0 : i32
    %c0_i32_0 = arith.constant 0 : i32
    %c0_i32_1 = arith.constant 0 : i32
    return %0, %c0_i32, %c0_i32_0 : i32, i32, i32
  }
  func.func @transform_4(%arg0: i32, %arg1: memref<1xi32, #tpu.memory_space<smem>>) -> (i32, i32) {
    %c0_i32 = arith.constant 0 : i32
    %c0_i32_0 = arith.constant 0 : i32
    %c0_i32_1 = arith.constant 0 : i32
    return %c0_i32, %c0_i32_0 : i32, i32
  }
  func.func @transform_5(%arg0: i32, %arg1: memref<1xi32, #tpu.memory_space<smem>>) -> (i32, i32, i32) {
    %c0 = arith.constant 0 : index
    %0 = memref.load %arg1[%c0] : memref<1xi32, #tpu.memory_space<smem>>
    %c0_i32 = arith.constant 0 : i32
    %c0_i32_0 = arith.constant 0 : i32
    %c0_i32_1 = arith.constant 0 : i32
    return %0, %c0_i32, %c0_i32_0 : i32, i32, i32
  }
  func.func @transform_6(%arg0: i32, %arg1: memref<1xi32, #tpu.memory_space<smem>>) -> (i32, i32, i32) {
    %c0 = arith.constant 0 : index
    %0 = memref.load %arg1[%c0] : memref<1xi32, #tpu.memory_space<smem>>
    %c0_i32 = arith.constant 0 : i32
    %c0_i32_0 = arith.constant 0 : i32
    %c0_i32_1 = arith.constant 0 : i32
    return %0, %c0_i32, %c0_i32_0 : i32, i32, i32
  }
  func.func @transform_7(%arg0: i32, %arg1: memref<1xi32, #tpu.memory_space<smem>>) -> (i32, i32, i32) {
    %c0_i32 = arith.constant 0 : i32
    %c0_i32_0 = arith.constant 0 : i32
    %c0_i32_1 = arith.constant 0 : i32
    return %arg0, %c0_i32, %c0_i32_0 : i32, i32, i32
  }
}

</mosaic_0001>

<bundles_post_ra>
// kernel: stacked_conv_blocks_separate_norm.1
= control target key start
LH: loop header
LB: loop body
LE: loop exit
PB: predicated region body
PF: predicated region fallthrough
CT: control target
= control target key end

     0   :  { %s2949_s29 = smov 0   ;;  %s4036_s0 = inlined_call_operand.<no memory space> [shape: s32[1], index: 0, kind: input, shape index: {}]   ;;  %s4037_s1 = inlined_call_operand.vmem [shape: f32[2,4,256], index: 1, kind: input, shape index: {}]   ;;  %s4038_s2 = inlined_call_operand.vmem [shape: f32[8,72], index: 2, kind: input, shape index: {}]   ;;  %s4039_s3 = inlined_call_operand.vmem [shape: f32[2,8,1], index: 3, kind: input, shape index: {}]   ;;  %s4040_s4 = inlined_call_operand.vmem [shape: f32[2,8,1], index: 4, kind: input, shape index: {}]   ;;  %s4041_s5 = inlined_call_operand.vmem [shape: f32[8,72], index: 5, kind: input, shape index: {}]   ;;  %s4042_s6 = inlined_call_operand.vmem [shape: f32[2,8,1], index: 6, kind: input, shape index: {}]   ;;  %s4043_s7 = inlined_call_operand.vmem [shape: f32[2,8,1], index: 7, kind: input, shape index: {}]   ;;  %s4044_s8 = inlined_call_operand.vmem [shape: f32[2,8,288], index: 8, kind: output, shape index: {}]  }
   0x1   :  { %13 = sst [smem:[#allocation5]] %s4036_s0 }
   0x2 LB: > { %s2811_s30 = sadd.s32 4294967295, %s2873_s29   ;;  %p2815_p0 = scmp.ge.s32.totalorder %s2873_s29, 1  ;;  %s2873_s29 = sphi %s2949_s29, %s19_s29  }
   0x3   : > { %p291_p1 = scmp.lt.s32.totalorder %s2873_s29, 3 }
   0x5   : > { %p292_p2 = pnand %p2815_p0, %p291_p1 }
   0x6   : > { %p343_p3 = scmp.lt.s32.totalorder (!%p292_p2), %s2811_s30, 1  ;;  %s2875_s12 = smov (!%p292_p2), 19  }
   0x7   : > { %295 = sbr.rel (%p292_p2) target bundleno = 1443 (0x5a3), region = 48  ;;  %s2876_s13 = smov (!%p292_p2), 21  }
   0x8   : > { %s2877_s14 = smov (!%p292_p2), 23   ;;  %s2878_s15 = smov (!%p292_p2), 25  }
   0x9   : > { %s2879_s16 = smov (!%p292_p2), 27   ;;  %s2880_s17 = smov (!%p292_p2), 29  }
   0xa   : > { %s2881_s18 = smov (!%p292_p2), 31   ;;  %s2882_s19 = smov (!%p292_p2), 33  }
   0xb   : > { %s2883_s20 = smov (!%p292_p2), 35   ;;  %s2884_s21 = smov (!%p292_p2), 37  }
   0xc   : > { %s4063_s30 = smov (!%p343_p3, %s2811_s30), 1  ;;  %s2885_s22 = smov 39   ;;  %v2887_v25 = vmov 0.0   ;;  %vm503_vm0 = vcmask 281752   ;;  %vm512_vm1 = vcmask 429352   ;;  %vm521_vm2 = vcmask 576952  }
   0xd   : > { %s2825_s0 = sshll.u32 %s4063_s30, 3  ;;  %s2886_s23 = smov 41   ;;  %492 = vst [vmem:[#allocation3] sm:$0xff] %v2887_v25  ;;  %vm530_vm3 = vcmask 724552   ;;  %vm539_vm4 = vcmask 872152   ;;  %vm548_vm5 = vcmask 1019752  }
   0xe   : > { %s2963_s11 = scalar_lea.vmem %s4037_s1, %s2825_s0  ;;  %493 = vst [vmem:[#allocation3 + $0x8] sm:$0xff] %v2887_v25  ;;  %s2888_s24 = smov 43   ;;  %vm557_vm6 = vcmask 1044472   ;;  %vm559_vm7 = vcmask 117760   ;;  %vm568_vm8 = vcmask 265352   ;;  %vm577_vm9 = vcmask 412952  }
   0xf   : > { %v496_v0 = vld [vmem:[%s2963_s11] sm:$0xf]  ;;  %v570_v15 = vld [vmem:[%s2963_s11 + $0x4] sm:$0xf]  ;;  %s2889_s25 = smov 45   ;;  %s2890_s26 = smov 47  }
  0x10   : > { %498 = vst [vmem:[#allocation1] ss:$2 sm:$0xff] %v496_v0  ;;  %v505_v1 = vld [vmem:[%s2963_s11] sm:$0xf]  ;;  %v579_v17 = vld [vmem:[%s2963_s11 + $0x4] sm:$0xf] }
  0x11   : > { %v514_v3 = vld [vmem:[%s2963_s11] sm:$0xf]  ;;  %v588_v19 = vld [vmem:[%s2963_s11 + $0x4] sm:$0xf]  ;;  %s2891_s27 = smov 49   ;;  %s2892_s28 = smov 91  }
  0x12   : > { %v523_v5 = vld [vmem:[%s2963_s11] sm:$0xf]  ;;  %v597_v21 = vld [vmem:[%s2963_s11 + $0x4] sm:$0xf]  ;;  %s2893_s0 = smov 90   ;;  %s2894_s9 = smov 92  }
  0x13   : > { %v532_v7 = vld [vmem:[%s2963_s11] sm:$0xf]  ;;  %v606_v23 = vld [vmem:[%s2963_s11 + $0x4] sm:$0xf]  ;;  %s2895_s10 = smov 109   ;;  %vm494_vm10 = vcmask 572416  }
  0x14   : > { %v541_v9 = vld [vmem:[%s2963_s11] sm:$0xf]  ;;  %v615_v26 = vld [vmem:[%s2963_s11 + $0x4] sm:$0xf]  ;;  %495 = vst.msk [vmem:[#allocation3 + $0x10] sm:$0xff] %vm494_vm10, %v2887_v25  ;;  %vm586_vm11 = vcmask 560552  }
  0x15   : > { %v550_v11 = vld [vmem:[%s2963_s11] sm:$0xf]  ;;  %v626_v28 = vld [vmem:[%s2963_s11 + $0x4] sm:$0xf]  ;;  %vm595_vm12 = vcmask 708152   ;;  %vm604_vm13 = vcmask 855752  }
  0x16   : > { %v561_v13 = vld [vmem:[%s2963_s11] sm:$0xf]  ;;  %v635_v30 = vld [vmem:[%s2963_s11 + $0x4] sm:$0xf]  ;;  %s2896_s11 = smov 108   ;;  %vm613_vm14 = vcmask 1003352  }
  0x17   : > { %v499_v2 = vld.sshfl [vmem:[#allocation1] sm:$0xff pattern:$0x75316420]  ;;  %vm622_vm15 = vcmask 1044456   ;;  %vm4047_vm10 = vcmask 588800  }
  0x18   : > { %500 = vrot.lane.b32.xlu0 %v499_v2, %s2875_s12  ;;  %507 = vst [vmem:[#allocation1] ss:$2 sm:$0xff] %v505_v1 }
  0x1f   : > { %v508_v4 = vld.sshfl [vmem:[#allocation1] sm:$0xff pattern:$0x75316420] }
  0x20   : > { %509 = vrot.lane.b32.xlu1 %v508_v4, %s2876_s13  ;;  %516 = vst [vmem:[#allocation1] ss:$2 sm:$0xff] %v514_v3  ;;  %s2897_s13 = smov 110  }
  0x27   : > { %v517_v6 = vld.sshfl [vmem:[#allocation1] sm:$0xff pattern:$0x75316420] }
  0x28   : > { %525 = vst [vmem:[#allocation1] ss:$2 sm:$0xff] %v523_v5  ;;  %518 = vrot.lane.b32.xlu2 %v517_v6, %s2877_s14  ;;  %s2898_s14 = smov 126  }
  0x2f   : > { %v526_v8 = vld.sshfl [vmem:[#allocation1] sm:$0xff pattern:$0x75316420] }
  0x30   : > { %534 = vst [vmem:[#allocation1] ss:$2 sm:$0xff] %v532_v7  ;;  %527 = vrot.lane.b32.xlu1 %v526_v8, %s2878_s15  ;;  %s2899_s15 = smov 127  }
  0x37   : > { %v535_v10 = vld.sshfl [vmem:[#allocation1] sm:$0xff pattern:$0x75316420] }
  0x38   : > { %536 = vrot.lane.b32.xlu0 %v535_v10, %s2879_s16  ;;  %543 = vst [vmem:[#allocation1] ss:$2 sm:$0xff] %v541_v9 }
  0x3f   : > { %v544_v12 = vld.sshfl [vmem:[#allocation1] sm:$0xff pattern:$0x75316420] }
  0x40   : > { %552 = vst [vmem:[#allocation1] ss:$2 sm:$0xff] %v550_v11  ;;  %545 = vrot.lane.b32.xlu2 %v544_v12, %s2880_s17 }
  0x47   : > { %v553_v14 = vld.sshfl [vmem:[#allocation1] sm:$0xff pattern:$0x75316420] }
  0x48   : > { %554 = vrot.lane.b32.xlu0 %v553_v14, %s2881_s18  ;;  %563 = vst [vmem:[#allocation1] ss:$2 sm:$0xff] %v561_v13  ;;  %s3491_s18 = sld [smem:[#allocation5]] }
  0x4e   : > { %p349_p4 = scmp.lt.s32.totalorder %s3491_s18, 1 }
  0x4f   : > { %v564_v16 = vld.sshfl [vmem:[#allocation1] sm:$0xff pattern:$0x75316420] }
  0x50   : > { %565 = vrot.lane.b32.xlu1 %v564_v16, %s2882_s19  ;;  %572 = vst [vmem:[#allocation1] ss:$2 sm:$0xff] %v570_v15  ;;  %s4065_s18 = smov (!%p349_p4, %s3491_s18), 1 }
  0x51   : > { %s2818_s19 = sshll.u32 %s4065_s18, 3 }
  0x57   : > { %v573_v18 = vld.sshfl [vmem:[#allocation1] sm:$0xff pattern:$0x75316420] }
  0x58   : > { %581 = vst [vmem:[#allocation1] ss:$2 sm:$0xff] %v579_v17  ;;  %574 = vrot.lane.b32.xlu2 %v573_v18, %s2883_s20 }
  0x5f   : > { %v582_v20 = vld.sshfl [vmem:[#allocation1] sm:$0xff pattern:$0x75316420] }
  0x60   : > { %583 = vrot.lane.b32.xlu0 %v582_v20, %s2884_s21  ;;  %590 = vst [vmem:[#allocation1] ss:$2 sm:$0xff] %v588_v19 }
  0x67   : > { %v591_v22 = vld.sshfl [vmem:[#allocation1] sm:$0xff pattern:$0x75316420] }
  0x68   : > { %599 = vst [vmem:[#allocation1] ss:$2 sm:$0xff] %v597_v21  ;;  %592 = vrot.lane.b32.xlu2 %v591_v22, %s2885_s22  ;;  %s352_s22 = scalar_lea.vmem %s4039_s3, %s2818_s19 }
  0x6f   : > { %v600_v24 = vld.sshfl [vmem:[#allocation1] sm:$0xff pattern:$0x75316420] }
  0x70   : > { %601 = vrot.lane.b32.xlu1 %v600_v24, %s2886_s23  ;;  %608 = vst [vmem:[#allocation1] ss:$2 sm:$0xff] %v606_v23 }
  0x77   : > { %v609_v27 = vld.sshfl [vmem:[#allocation1] sm:$0xff pattern:$0x75316420] }
  0x78   : > { %610 = vrot.lane.b32.xlu0 %v609_v27, %s2888_s24  ;;  %617 = vst [vmem:[#allocation1] ss:$2 sm:$0xff] %v615_v26 }
  0x7f   : > { %v618_v29 = vld.sshfl [vmem:[#allocation1] sm:$0xff pattern:$0x75316420] }
  0x80   : > { %619 = vrot.lane.b32.xlu1 %v618_v29, %s2889_s25  ;;  %628 = vst [vmem:[#allocation1] ss:$2 sm:$0xff] %v626_v28  ;;  %s358_s25 = scalar_lea.vmem %s4040_s4, %s2818_s19 }
  0x82   : > { %v519_v35 = vpop.permute.xlu2 %518 }
  0x87   : > { %v629_v31 = vld.sshfl [vmem:[#allocation1] sm:$0xff pattern:$0x75316420] }
  0x88   : > { %637 = vst [vmem:[#allocation1] ss:$2 sm:$0xff] %v635_v30  ;;  %630 = vrot.lane.b32.xlu2 %v629_v31, %s2890_s26 }
  0x8a   : > { %v501_v32 = vpop.permute.xlu0 %500 }
  0x8b   : > { %504 = vst.msk [vmem:[#allocation3] sm:$0xf] %vm503_vm0, %v501_v32  ;;  %vm624_vm0 = vcmask 101376  }
  0x8f   : > { %v638_v33 = vld.sshfl [vmem:[#allocation1] sm:$0xff pattern:$0x75316420] }
  0x90   : > { %639 = vrot.lane.b32.xlu0 %v638_v33, %s2891_s27  ;;  %s360_s27 = sld [smem:[#allocation5]] }
  0x92   : > { %v510_v34 = vpop.permute.xlu1 %509 }
  0x93   : > { %513 = vst.msk [vmem:[#allocation3] sm:$0xf] %vm512_vm1, %v510_v34  ;;  %vm633_vm1 = vcmask 248952  }
  0x94   : > { %522 = vst.msk [vmem:[#allocation3] sm:$0xf] %vm521_vm2, %v519_v35  ;;  %vm642_vm2 = vcmask 396552   ;;  %v486_v35 = vld [vmem:[%s4038_s2] sm:$0xff] }
  0x96   : > { %p361_p5 = scmp.lt.s32.totalorder %s360_s27, 1 }
  0x98   : > { %s4067_s27 = smov (!%p361_p5, %s360_s27), 1 }
  0x9a   : > { %v546_v37 = vpop.permute.xlu2 %545 }
  0xa2   : > { %v528_v36 = vpop.permute.xlu1 %527 }
  0xa3   : > { %531 = vst.msk [vmem:[#allocation3] sm:$0xf] %vm530_vm3, %v528_v36  ;;  %vm649_vm3 = vcmask 261120  }
  0xaa   : > { %v537_v38 = vpop.permute.xlu0 %536 }
  0xab   : > { %540 = vst.msk [vmem:[#allocation3] sm:$0xf] %vm539_vm4, %v537_v38  ;;  %vm810_vm4 = vcmask 736256  }
  0xac   : > { %549 = vst.msk [vmem:[#allocation3] sm:$0xf] %vm548_vm5, %v546_v37  ;;  %vm747_vm5 = vcmask 883712  }
  0xb2   : > { %v575_v42 = vpop.permute.xlu2 %574 }
  0xba   : > { %v555_v39 = vpop.permute.xlu0 %554 }
  0xbb   : > { %558 = vst.msk [vmem:[#allocation3] sm:$0xf] %vm557_vm6, %v555_v39  ;;  %vm4048_vm6 = vcmask 744448  }
  0xbc   : > { %560 = vst.msk [vmem:[#allocation3 + $0x8] sm:$0xf] %vm559_vm7, %v555_v39  ;;  %vm768_vm7 = vcmask 752640  }
  0xc2   : > { %v2982_v40 = vld [vmem:[#allocation3] sm:$0xff]  ;;  %v566_v41 = vpop.permute.xlu1 %565  ;;  %v593_v43 = vpop.permute.xlu2 %592 }
  0xc3   : > { %783 = vrot.lane.b32.xlu0 %v2982_v40, %s2892_s28  ;;  %569 = vst.msk [vmem:[#allocation3 + $0x8] sm:$0xf] %vm568_vm8, %v566_v41  ;;  %804 = vrot.lane.b32.xlu1 %v2982_v40, %s2893_s0  ;;  %vm4046_vm8 = vcmask 891904  }
  0xc4   : > { %578 = vst.msk [vmem:[#allocation3 + $0x8] sm:$0xf] %vm577_vm9, %v575_v42  ;;  %762 = vrot.lane.b32.xlu2 %v2982_v40, %s2894_s9  ;;  %vm705_vm9 = vcmask 900096   ;;  %v848_v42 = vsel %vm4047_vm10, %v486_v35, 0 }
  0xcb   : > { %720 = vrot.lane.b32.xlu0 %v2982_v40, %s2895_s10  ;;  %741 = vrot.lane.b32.xlu1 %v2982_v40, %s2896_s11 }
  0xd2   : > { %v584_v44 = vpop.permute.xlu0 %583 }
  0xd3   : > { %699 = vrot.lane.b32.xlu0 %v2982_v40, %s2897_s13  ;;  %587 = vst.msk [vmem:[#allocation3 + $0x8] sm:$0xf] %vm586_vm11, %v584_v44  ;;  %vm684_vm11 = vcmask 1031168  }
  0xd4   : > { %596 = vst.msk [vmem:[#allocation3 + $0x8] sm:$0xf] %vm595_vm12, %v593_v43  ;;  %vm4045_vm12 = vcmask 1039360  }
  0xdb   : > { %678 = vrot.lane.b32.xlu0 %v2982_v40, %s2898_s14 }
  0xe2   : > { %v602_v45 = vpop.permute.xlu1 %601  ;;  %v631_v48 = vpop.permute.xlu2 %630 }
  0xe3   : > { %605 = vst.msk [vmem:[#allocation3 + $0x8] sm:$0xf] %vm604_vm13, %v602_v45 }
  0xea   : > { %v611_v46 = vpop.permute.xlu0 %610 }
  0xeb   : > { %614 = vst.msk [vmem:[#allocation3 + $0x8] sm:$0xf] %vm613_vm14, %v611_v46 }
  0xf2   : > { %v620_v47 = vpop.permute.xlu1 %619 }
  0xf3   : > { %623 = vst.msk [vmem:[#allocation3 + $0x8] sm:$0xf] %vm622_vm15, %v620_v47 }
  0xf4   : > { %625 = vst.msk [vmem:[#allocation3 + $0x10] sm:$0xf] %vm624_vm0, %v620_v47 }
  0xf5   : > { %634 = vst.msk [vmem:[#allocation3 + $0x10] sm:$0xf] %vm633_vm1, %v631_v48  ;;  %v3136_v48 = vand.u32 4294901760, %v848_v42 }
  0xfa   : > { %v2998_v49 = vld [vmem:[#allocation3 + $0x8] sm:$0xff] }
  0xfb   : > { %785 = vrot.lane.b32.xlu1 %v2998_v49, %s2892_s28  ;;  %806 = vrot.lane.b32.xlu2 %v2998_v49, %s2893_s0 }
  0xfc   : > { %764 = vrot.lane.b32.xlu0 %v2998_v49, %s2894_s9 }
 0x102   : > { %v640_v50 = vpop.permute.xlu0 %639 }
 0x103   : > { %643 = vst.msk [vmem:[#allocation3 + $0x10] sm:$0xf] %vm642_vm2, %v640_v50  ;;  %722 = vrot.lane.b32.xlu1 %v2998_v49, %s2895_s10  ;;  %743 = vrot.lane.b32.xlu2 %v2998_v49, %s2896_s11 }
 0x104   : > { %657 = vrot.lane.b32.xlu0 %v2982_v40, %s2899_s15 }
 0x10a   : > { %v646_v51 = vld [vmem:[#allocation3 + $0x10] sm:$0xff] }
 0x10b   : > { %650 = vst.msk [vmem:[#allocation2 + $0x10] sm:$0xff] %vm649_vm3, %v646_v51  ;;  %701 = vrot.lane.b32.xlu1 %v2998_v49, %s2897_s13  ;;  %808 = vrot.lane.b32.xlu2 %v646_v51, %s2893_s0 }
 0x10c   : > { %724 = vrot.lane.b32.xlu0 %v646_v51, %s2895_s10 }
 0x113   : > { %680 = vrot.lane.b32.xlu1 %v2998_v49, %s2898_s14  ;;  %787 = vrot.lane.b32.xlu2 %v646_v51, %s2892_s28 }
 0x114   : > { %661 = vrot.lane.b32.xlu0 %v646_v51, %s2899_s15 }
 0x11b   : > { %659 = vrot.lane.b32.xlu1 %v2998_v49, %s2899_s15  ;;  %766 = vrot.lane.b32.xlu2 %v646_v51, %s2894_s9 }
 0x11e   : > { %v763_v53 = vpop.permute.xlu2 %762 }
 0x123   : > { %745 = vrot.lane.b32.xlu2 %v646_v51, %s2896_s11  ;;  %703 = vrot.lane.b32.xlu1 %v646_v51, %s2897_s13 }
 0x12b   : > { %682 = vrot.lane.b32.xlu2 %v646_v51, %s2898_s14 }
 0x135   : > { %v784_v52 = vpop.permute.xlu0 %783  ;;  %v805_v55 = vpop.permute.xlu1 %804 }
 0x13d   : > { %v721_v54 = vpop.permute.xlu0 %720  ;;  %v742_v1 = vpop.permute.xlu1 %741 }
 0x145   : > { %v3040_v61 = vpop.permute.xlu0 %699 }
 0x14d   : > { %v3047_v3 = vpop.permute.xlu0 %678 }
 0x155   : > { %v3027_v56 = vpop.permute.xlu2 %806 }
 0x156   : > { %v811_v57 = vsel %vm810_vm4, %v805_v55, %v3027_v56 }
 0x157   : > { %v3031_v58 = vand.u32 4294901760, %v811_v57 }
 0x159   : > { %858 = vmatpush.msra.mxu0 %v3031_v58  ;;  %998 = vmatpush.msra.mxu3 %v3031_v58  ;;  %v3036_v59 = vsub.f32 %v811_v57, %v3031_v58 }
 0x15b   : > { %959 = vmatpush.msra.mxu2 %v3036_v59  ;;  %v893_v60 = vand.u32 4294901760, %v3036_v59 }
 0x15d   : > { %v3042_v62 = vpop.permute.xlu2 %743  ;;  %v894_v63 = vsub.f32 %v3036_v59, %v893_v60 }
 0x15e   : > { %v748_v4 = vsel %vm747_vm5, %v742_v1, %v3042_v62  ;;  %v3157_v1 = vsub.f32 %v848_v42, %v3136_v48 }
 0x15f   : > { %v895_v0 = vand.u32 4294901760, %v894_v63  ;;  %v3052_v5 = vand.u32 4294901760, %v748_v4 }
 0x161   : > { %896 = vmatpush.msra.mxu1 %v895_v0  ;;  %v3060_v12 = vsub.f32 %v748_v4, %v3052_v5 }
 0x163   : > { %v911_v17 = vand.u32 4294901760, %v3060_v12 }
 0x165   : > { %v809_v2 = vpop.permute.xlu2 %808  ;;  %v912_v27 = vsub.f32 %v3060_v12, %v911_v17 }
 0x166   : > { %818 = vst.msk [vmem:[#allocation2 + $0xd0] sm:$0xff] %vm649_vm3, %v809_v2  ;;  %v812_v38 = vsel %vm810_vm4, %v3027_v56, %v809_v2  ;;  %v3162_v2 = vand.u32 4294901760, %v2982_v40 }
 0x167   : > { %v913_v30 = vand.u32 4294901760, %v912_v27  ;;  %v3131_v45 = vand.u32 4294901760, %v812_v38 }
 0x169   : > { %v3149_v57 = vsub.f32 %v812_v38, %v3131_v45 }
 0x16d   : > { %v786_v6 = vpop.permute.xlu1 %785  ;;  %v788_v7 = vpop.permute.xlu2 %787 }
 0x16e   : > { %v790_v8 = vsel %vm4048_vm6, %v784_v52, %v786_v6  ;;  %797 = vst.msk [vmem:[#allocation2 + $0xb8] sm:$0xff] %vm649_vm3, %v788_v7  ;;  %v765_v9 = vpop.permute.xlu0 %764  ;;  %v791_v44 = vsel %vm4048_vm6, %v786_v6, %v788_v7  ;;  %v1143_v7 = vand.u32 4294901760, %v3149_v57 }
 0x16f   : > { %v769_v10 = vsel %vm768_vm7, %v763_v53, %v765_v9  ;;  %v3057_v11 = vand.u32 4294901760, %v790_v8  ;;  %v3141_v53 = vand.u32 4294901760, %v791_v44 }
 0x170   : > { %v3062_v13 = vand.u32 4294901760, %v769_v10 }
 0x171   : > { %860 = vmatpush.msra.mxu0 %v3057_v11  ;;  %1000 = vmatpush.msra.mxu3 %v3057_v11  ;;  %v3067_v14 = vsub.f32 %v790_v8, %v3057_v11  ;;  %v3169_v4 = vsub.f32 %v791_v44, %v3141_v53 }
 0x172   : > { %v3070_v15 = vsub.f32 %v769_v10, %v3062_v13 }
 0x173   : > { %862 = vmatpush.msra.mxu0 %v3062_v13  ;;  %962 = vmatpush.msra.mxu2 %v3067_v14  ;;  %v899_v16 = vand.u32 4294901760, %v3067_v14 }
 0x174   : > { %1002 = vmatpush.msra.mxu3 %v3062_v13  ;;  %v905_v18 = vand.u32 4294901760, %v3070_v15 }
 0x175   : > { %v3078_v19 = vpop.permute.xlu1 %722  ;;  %v767_v20 = vpop.permute.xlu2 %766  ;;  %864 = vmatpush.msra.mxu0 %v3052_v5  ;;  %965 = vmatpush.msra.mxu2 %v3070_v15  ;;  %v900_v21 = vsub.f32 %v3067_v14, %v899_v16 }
 0x176   : > { %v727_v22 = vsel %vm4046_vm8, %v721_v54, %v3078_v19  ;;  %776 = vst.msk [vmem:[#allocation2 + $0xa0] sm:$0xff] %vm649_vm3, %v767_v20  ;;  %v3088_v23 = vpop.permute.xlu0 %657  ;;  %1004 = vmatpush.msra.mxu3 %v3052_v5  ;;  %v906_v24 = vsub.f32 %v3070_v15, %v905_v18  ;;  %v770_v46 = vsel %vm768_vm7, %v765_v9, %v767_v20 }
 0x177   : > { %968 = vmatpush.msra.mxu2 %v3060_v12  ;;  %v3095_v25 = vand.u32 4294901760, %v727_v22  ;;  %v901_v26 = vand.u32 4294901760, %v900_v21  ;;  %v3187_v20 = vsub.f32 %v2982_v40, %v3162_v2  ;;  %v1144_v40 = vsub.f32 %v3149_v57, %v1143_v7 }
 0x178   : > { %v907_v28 = vand.u32 4294901760, %v906_v24  ;;  %v1149_v24 = vand.u32 4294901760, %v3169_v4 }
 0x179   : > { %866 = vmatpush.msra.mxu0 %v3095_v25  ;;  %902 = vmatpush.msra.mxu1 %v901_v26  ;;  %v3102_v29 = vsub.f32 %v727_v22, %v3095_v25  ;;  %v941_v38 = vand.u32 4294901760, %v3187_v20 }
 0x17a   : > { %1006 = vmatpush.msra.mxu3 %v3095_v25 }
 0x17b   : > { %908 = vmatpush.msra.mxu1 %v907_v28  ;;  %971 = vmatpush.msra.mxu2 %v3102_v29  ;;  %v917_v31 = vand.u32 4294901760, %v3102_v29 }
 0x17d   : > { %v3107_v32 = vpop.permute.xlu1 %701  ;;  %v746_v33 = vpop.permute.xlu2 %745  ;;  %914 = vmatpush.msra.mxu1 %v913_v30  ;;  %v918_v34 = vsub.f32 %v3102_v29, %v917_v31 }
 0x17e   : > { %v706_v36 = vsel %vm705_vm9, %v3040_v61, %v3107_v32  ;;  %755 = vst.msk [vmem:[#allocation2 + $0x88] sm:$0xff] %vm649_vm3, %v746_v33  ;;  %v725_v37 = vpop.permute.xlu0 %724  ;;  %v749_v54 = vsel %vm747_vm5, %v3042_v62, %v746_v33  ;;  %v3151_v61 = vand.u32 4294901760, %v770_v46 }
 0x17f   : > { %734 = vst.msk [vmem:[#allocation2 + $0x70] sm:$0xff] %vm649_vm3, %v725_v37  ;;  %v3122_v39 = vand.u32 4294901760, %v706_v36  ;;  %v919_v41 = vand.u32 4294901760, %v918_v34  ;;  %v728_v62 = vsel %vm4046_vm8, %v3078_v19, %v725_v37  ;;  %v3171_v6 = vand.u32 4294901760, %v749_v54 }
 0x180   : > { %v3176_v8 = vsub.f32 %v770_v46, %v3151_v61  ;;  %v3180_v10 = vand.u32 4294901760, %v728_v62  ;;  %v3183_v19 = vand.u32 4294901760, %v3157_v1  ;;  %v1145_v46 = vand.u32 4294901760, %v1144_v40 }
 0x181   : > { %868 = vmatpush.msra.mxu0 %v3122_v39  ;;  %920 = vmatpush.msra.mxu1 %v919_v41  ;;  %v3127_v43 = vsub.f32 %v706_v36, %v3122_v39  ;;  %v3194_v26 = vsub.f32 %v749_v54, %v3171_v6  ;;  %v1150_v41 = vsub.f32 %v3169_v4, %v1149_v24 }
 0x182   : > { %1008 = vmatpush.msra.mxu3 %v3122_v39  ;;  %v1155_v30 = vand.u32 4294901760, %v3176_v8  ;;  %v3206_v35 = vsub.f32 %v728_v62, %v3180_v10  ;;  %v878_v36 = vsub.f32 %v3157_v1, %v3183_v19 }
 0x183   : > { %974 = vmatpush.msra.mxu2 %v3127_v43  ;;  %v923_v47 = vand.u32 4294901760, %v3127_v43  ;;  %v1161_v42 = vand.u32 4294901760, %v3194_v26 }
 0x185   : > { %v681_v50 = vpop.permute.xlu1 %680  ;;  %v683_v51 = vpop.permute.xlu2 %682  ;;  %v924_v52 = vsub.f32 %v3127_v43, %v923_v47 }
 0x186   : > { %v685_v55 = vsel %vm684_vm11, %v3047_v3, %v681_v50  ;;  %692 = vst.msk [vmem:[#allocation2 + $0x40] sm:$0xff] %vm649_vm3, %v683_v51  ;;  %v662_v56 = vpop.permute.xlu0 %661  ;;  %v686_v27 = vsel %vm684_vm11, %v681_v50, %v683_v51  ;;  %v1156_v50 = vsub.f32 %v3176_v8, %v1155_v30 }
 0x187   : > { %671 = vst.msk [vmem:[#allocation2 + $0x28] sm:$0xff] %vm649_vm3, %v662_v56  ;;  %v3154_v63 = vand.u32 4294901760, %v685_v55  ;;  %v925_v0 = vand.u32 4294901760, %v924_v52  ;;  %v3220_v44 = vand.u32 4294901760, %v686_v27  ;;  %v1167_v52 = vand.u32 4294901760, %v3206_v35 }
 0x188   : > { %v1157_v40 = vand.u32 4294901760, %v1156_v50 }
 0x189   : > { %870 = vmatpush.msra.mxu0 %v3154_v63  ;;  %926 = vmatpush.msra.mxu1 %v925_v0  ;;  %v3166_v3 = vsub.f32 %v685_v55, %v3154_v63  ;;  %v3232_v55 = vand.u32 4294901760, %v878_v36  ;;  %v3241_v0 = vand.u32 4294901760, %v2998_v49  ;;  %v3249_v59 = vsub.f32 %v686_v27, %v3220_v44 }
 0x18a   : > { %1010 = vmatpush.msra.mxu3 %v3154_v63  ;;  %v1168_v36 = vsub.f32 %v3206_v35, %v1167_v52 }
 0x18b   : > { %977 = vmatpush.msra.mxu2 %v3166_v3  ;;  %v929_v9 = vand.u32 4294901760, %v3166_v3 }
 0x18c   : > { %v1169_v15 = vand.u32 4294901760, %v1168_v36 }
 0x18d   : > { %v660_v21 = vpop.permute.xlu1 %659  ;;  %v930_v22 = vsub.f32 %v3166_v3, %v929_v9 }
 0x18e   : > { %v664_v28 = vsel %vm4045_vm12, %v3088_v23, %v660_v21  ;;  %v665_v37 = vsel %vm4045_vm12, %v660_v21, %v662_v56  ;;  %v942_v56 = vsub.f32 %v3187_v20, %v941_v38  ;;  %v1151_v21 = vand.u32 4294901760, %v1150_v41 }
 0x18f   : > { %v3203_v33 = vand.u32 4294901760, %v664_v28  ;;  %v931_v34 = vand.u32 4294901760, %v930_v22  ;;  %v3230_v54 = vand.u32 4294901760, %v665_v37  ;;  %v1179_v41 = vand.u32 4294901760, %v3249_v59 }
 0x190   : > { %v943_v14 = vand.u32 4294901760, %v942_v56 }
 0x191   : > { %872 = vmatpush.msra.mxu0 %v3203_v33  ;;  %932 = vmatpush.msra.mxu1 %v931_v34  ;;  %v3214_v23 = vsub.f32 %v664_v28, %v3203_v33  ;;  %v1162_v28 = vsub.f32 %v3194_v26, %v1161_v42  ;;  %v1180_v12 = vsub.f32 %v3249_v59, %v1179_v41 }
 0x192   : > { %1012 = vmatpush.msra.mxu3 %v3203_v33 }
 0x193   : > { %874 = vmatpush.msra.mxu0 %v3162_v2  ;;  %980 = vmatpush.msra.mxu2 %v3214_v23  ;;  %v935_v51 = vand.u32 4294901760, %v3214_v23 }
 0x194   : > { %1014 = vmatpush.msra.mxu3 %v3162_v2  ;;  %880 = vmatmul.f32.vlgmr.msra.gmra.mxu0 %v3232_v55 }
 0x195   : > { %1032 = vmatpush.msrb.mxu0 %v893_v60  ;;  %v704_v62 = vpop.permute.xlu1 %703  ;;  %983 = vmatpush.msra.mxu2 %v3187_v20  ;;  %v936_v22 = vsub.f32 %v3214_v23, %v935_v51 }
 0x196   : > { %1146 = vmatpush.msrb.mxu3 %v1145_v46  ;;  %v707_v60 = vsel %vm705_vm9, %v3107_v32, %v704_v62  ;;  %713 = vst.msk [vmem:[#allocation2 + $0x58] sm:$0xff] %vm649_vm3, %v704_v62  ;;  %v3264_v32 = vsub.f32 %v665_v37, %v3230_v54  ;;  %v3275_v46 = vsub.f32 %v2998_v49, %v3241_v0 }
 0x197   : > { %1036 = vmatpush.msrb.mxu0 %v899_v16  ;;  %1108 = vmatpush.msrb.mxu2 %v3131_v45  ;;  %v937_v34 = vand.u32 4294901760, %v936_v22  ;;  %v3260_v23 = vand.u32 4294901760, %v707_v60  ;;  %v1163_v16 = vand.u32 4294901760, %v1162_v28 }
 0x198   : > { %1152 = vmatpush.msrb.mxu3 %v1151_v21  ;;  %v1185_v37 = vand.u32 4294901760, %v3264_v32  ;;  %986 = vmatmul.f32.vlgmr.msra.gmra.mxu2 %v3157_v1 }
 0x199   : > { %1040 = vmatpush.msrb.mxu0 %v905_v18  ;;  %1110 = vmatpush.msrb.mxu2 %v3141_v53  ;;  %v3270_v27 = vsub.f32 %v707_v60, %v3260_v23 }
 0x19a   : > { %1158 = vmatpush.msrb.mxu3 %v1157_v40  ;;  %938 = vmatpush.msra.mxu1 %v937_v34 }
 0x19b   : > { %1044 = vmatpush.msrb.mxu0 %v911_v17  ;;  %1112 = vmatpush.msrb.mxu2 %v3151_v61  ;;  %v1173_v18 = vand.u32 4294901760, %v3270_v27  ;;  %v1191_v17 = vand.u32 4294901760, %v3275_v46 }
 0x19c   : > { %1164 = vmatpush.msrb.mxu3 %v1163_v16  ;;  %944 = vmatpush.msra.mxu1 %v943_v14 }
 0x19d   : > { %1048 = vmatpush.msrb.mxu0 %v917_v31  ;;  %1114 = vmatpush.msrb.mxu2 %v3171_v6  ;;  %v1174_v49 = vsub.f32 %v3270_v27, %v1173_v18  ;;  %v1181_v31 = vand.u32 4294901760, %v1180_v12 }
 0x19e   : > { %1078 = vmatpush.msrb.mxu1 %v3031_v58  ;;  %1170 = vmatpush.msrb.mxu3 %v1169_v15  ;;  %v1186_v58 = vsub.f32 %v3264_v32, %v1185_v37 }
 0x19f   : > { %1052 = vmatpush.msrb.mxu0 %v923_v47  ;;  %1116 = vmatpush.msrb.mxu2 %v3180_v10  ;;  %v1175_v29 = vand.u32 4294901760, %v1174_v49 }
 0x1a0   : > { %1080 = vmatpush.msrb.mxu1 %v3057_v11  ;;  %1018 = vmatmul.f32.vlgmr.msra.gmra.mxu3 %v3183_v19  ;;  %v1192_v11 = vsub.f32 %v3275_v46, %v1191_v17  ;;  %v1187_v43 = vand.u32 4294901760, %v1186_v58 }
 0x1a1   : > { %1056 = vmatpush.msrb.mxu0 %v929_v9  ;;  %1118 = vmatpush.msrb.mxu2 %v3260_v23  ;;  %v827_v9 = vld [vmem:[#allocation2 + $0x40] sm:$0xff] }
 0x1a2   : > { %1082 = vmatpush.msrb.mxu1 %v3062_v13  ;;  %1176 = vmatpush.msrb.mxu3 %v1175_v29  ;;  %v1193_v13 = vand.u32 4294901760, %v1192_v11 }
 0x1a3   : > { %1060 = vmatpush.msrb.mxu0 %v935_v51  ;;  %1120 = vmatpush.msrb.mxu2 %v3220_v44 }
 0x1a4   : > { %1084 = vmatpush.msrb.mxu1 %v3052_v5  ;;  %1182 = vmatpush.msrb.mxu3 %v1181_v31  ;;  %v845_v5 = vld [vmem:[#allocation2 + $0xd0] sm:$0xff] }
 0x1a5   : > { %1064 = vmatpush.msrb.mxu0 %v941_v38  ;;  %1122 = vmatpush.msrb.mxu2 %v3230_v54 }
 0x1a6   : > { %1086 = vmatpush.msrb.mxu1 %v3095_v25  ;;  %1188 = vmatpush.msrb.mxu3 %v1187_v43  ;;  %v842_v25 = vld [vmem:[#allocation2 + $0xb8] sm:$0xff] }
 0x1a7   : > { %1209 = vmatpush.msra.mxu0 %v3149_v57  ;;  %1124 = vmatpush.msrb.mxu2 %v3241_v0  ;;  %v3349_v47 = vand.u32 4294901760, %v842_v25 }
 0x1a8   : > { %1088 = vmatpush.msrb.mxu1 %v3122_v39  ;;  %1194 = vmatpush.msrb.mxu3 %v1193_v13  ;;  %v3344_v39 = vand.u32 4294901760, %v845_v5 }
 0x1a9   : > { %1212 = vmatpush.msra.mxu0 %v3169_v4  ;;  %1282 = vmatpush.msra.mxu2 %v1143_v7  ;;  %v830_v4 = vld [vmem:[#allocation2 + $0x58] sm:$0xff] }
 0x1aa   : > { %1090 = vmatpush.msrb.mxu1 %v3154_v63  ;;  %1328 = vmatpush.msra.mxu3 %v3131_v45  ;;  %v3357_v57 = vsub.f32 %v845_v5, %v3344_v39  ;;  %v833_v63 = vld [vmem:[#allocation2 + $0x70] sm:$0xff]  ;;  %v3389_v20 = vand.u32 4294901760, %v830_v4 }
 0x1ab   : > { %1215 = vmatpush.msra.mxu0 %v3176_v8  ;;  %1286 = vmatpush.msra.mxu2 %v1149_v24  ;;  %v3378_v7 = vand.u32 4294901760, %v833_v63 }
 0x1ac   : > { %1092 = vmatpush.msrb.mxu1 %v3203_v33  ;;  %1330 = vmatpush.msra.mxu3 %v3141_v53  ;;  %v1393_v8 = vand.u32 4294901760, %v3357_v57  ;;  %v3413_v50 = vsub.f32 %v830_v4, %v3389_v20 }
 0x1ad   : > { %946 = vmatmul.f32.vlgmr.msra.gmra.mxu1 %v3136_v48  ;;  %1218 = vmatpush.msra.mxu0 %v3194_v26  ;;  %v824_v26 = vld [vmem:[#allocation2 + $0x28] sm:$0xff]  ;;  %v3400_v33 = vsub.f32 %v833_v63, %v3378_v7 }
 0x1ae   : > { %1290 = vmatpush.msra.mxu2 %v1155_v30  ;;  %1094 = vmatpush.msrb.mxu1 %v3162_v2  ;;  %v3366_v2 = vsub.f32 %v842_v25, %v3349_v47  ;;  %v1394_v30 = vsub.f32 %v3357_v57, %v1393_v8  ;;  %v3415_v51 = vand.u32 4294901760, %v824_v26  ;;  %v1423_v60 = vand.u32 4294901760, %v3413_v50 }
 0x1af   : > { %1332 = vmatpush.msra.mxu3 %v3151_v61  ;;  %1221 = vmatpush.msra.mxu0 %v3206_v35  ;;  %v3402_v35 = vand.u32 4294901760, %v827_v9  ;;  %v1417_v22 = vand.u32 4294901760, %v3400_v33 }
 0x1b0   : > { %1248 = vmatpush.msra.mxu1 %v3131_v45  ;;  %1294 = vmatpush.msra.mxu2 %v1161_v42  ;;  %v839_v45 = vld [vmem:[#allocation2 + $0xa0] sm:$0xff]  ;;  %v1399_v24 = vand.u32 4294901760, %v3366_v2  ;;  %v821_v42 = vld [vmem:[#allocation2 + $0x10] sm:$0xff]  ;;  %v1395_v56 = vand.u32 4294901760, %v1394_v30  ;;  %v1424_v14 = vsub.f32 %v3413_v50, %v1423_v60 }
 0x1b1   : > { %1334 = vmatpush.msra.mxu3 %v3171_v6  ;;  %1224 = vmatpush.msra.mxu0 %v3270_v27  ;;  %v3428_v21 = vsub.f32 %v827_v9, %v3402_v35  ;;  %v1418_v34 = vsub.f32 %v3400_v33, %v1417_v22 }
 0x1b2   : > { %1250 = vmatpush.msra.mxu1 %v3141_v53  ;;  %1298 = vmatpush.msra.mxu2 %v1167_v52  ;;  %v836_v53 = vld [vmem:[#allocation2 + $0x88] sm:$0xff]  ;;  %v1425_v15 = vand.u32 4294901760, %v1424_v14 }
 0x1b3   : > { %1336 = vmatpush.msra.mxu3 %v3180_v10  ;;  %1066 = vmatmul.f32.vlgmr.msrb.gmra.mxu0 %v3136_v48  ;;  %v3368_v3 = vand.u32 4294901760, %v836_v53  ;;  %v1419_v27 = vand.u32 4294901760, %v1418_v34 }
 0x1b4   : > { %1252 = vmatpush.msra.mxu1 %v3151_v61  ;;  %1227 = vmatpush.msra.mxu0 %v3249_v59  ;;  %v3359_v61 = vand.u32 4294901760, %v839_v45  ;;  %v1434_v59 = vsub.f32 %v824_v26, %v3415_v51 }
 0x1b5   : > { %1302 = vmatpush.msra.mxu2 %v1173_v18  ;;  %1338 = vmatpush.msra.mxu3 %v3260_v23 }
 0x1b6   : > { %1130 = vmatmul.f32.vlgmr.msrb.gmra.mxu2 %v3232_v55  ;;  %1096 = vmatmul.f32.vlgmr.msrb.gmra.mxu1 %v3136_v48  ;;  %v1435_v16 = vand.u32 4294901760, %v1434_v59 }
 0x1b7   : > { %1230 = vmatpush.msra.mxu0 %v3264_v32  ;;  %1254 = vmatpush.msra.mxu1 %v3171_v6  ;;  %v3376_v6 = vsub.f32 %v839_v45, %v3359_v61 }
 0x1b8   : > { %1306 = vmatpush.msra.mxu2 %v1179_v41  ;;  %1196 = vmatmul.f32.vlgmr.msrb.gmra.mxu3 %v3136_v48  ;;  %v1436_v18 = vsub.f32 %v1434_v59, %v1435_v16 }
 0x1b9   : > { %1233 = vmatpush.msra.mxu0 %v3275_v46  ;;  %1340 = vmatpush.msra.mxu3 %v3220_v44  ;;  %v1405_v38 = vand.u32 4294901760, %v3376_v6 }
 0x1ba   : > { %1256 = vmatpush.msra.mxu1 %v3180_v10  ;;  %1310 = vmatpush.msra.mxu2 %v1185_v37  ;;  %v3387_v10 = vsub.f32 %v836_v53, %v3368_v3  ;;  %v1437_v12 = vand.u32 4294901760, %v1436_v18 }
 0x1bb   : > { %1358 = vmatpush.msrb.mxu0 %v3344_v39  ;;  %1342 = vmatpush.msra.mxu3 %v3230_v54  ;;  %v1406_v62 = vsub.f32 %v3376_v6, %v1405_v38 }
 0x1bc   : > { %1258 = vmatpush.msra.mxu1 %v3260_v23  ;;  %1314 = vmatpush.msra.mxu2 %v1191_v17  ;;  %v1411_v52 = vand.u32 4294901760, %v3387_v10  ;;  %v1429_v23 = vand.u32 4294901760, %v3428_v21 }
 0x1bd   : > { %1360 = vmatpush.msrb.mxu0 %v3349_v47  ;;  %1344 = vmatpush.msra.mxu3 %v3241_v0  ;;  %v1407_v40 = vand.u32 4294901760, %v1406_v62 }
 0x1be   : > { %1459 = vmatpush.msrb.mxu2 %v3357_v57  ;;  %1260 = vmatpush.msra.mxu1 %v3220_v44  ;;  %v1400_v44 = vsub.f32 %v3366_v2, %v1399_v24  ;;  %v1430_v41 = vsub.f32 %v3428_v21, %v1429_v23 }
 0x1bf   : > { %1498 = vmatpush.msrb.mxu3 %v3344_v39  ;;  %1316 = vmatmul.f32.vlgmr.msra.gmra.mxu2 %v3136_v48 }
 0x1c0   : > { %1362 = vmatpush.msrb.mxu0 %v3359_v61  ;;  %1462 = vmatpush.msrb.mxu2 %v3366_v2  ;;  %v1401_v28 = vand.u32 4294901760, %v1400_v44  ;;  %v1431_v37 = vand.u32 4294901760, %v1430_v41 }
 0x1c1   : > { %1262 = vmatpush.msra.mxu1 %v3230_v54  ;;  %1500 = vmatpush.msrb.mxu3 %v3349_v47  ;;  %v3420_v54 = vand.u32 4294901760, %v821_v42 }
 0x1c2   : > { %1236 = vmatmul.f32.vlgmr.msra.gmra.mxu0 %v3157_v1  ;;  %1346 = vmatmul.f32.vlgmr.msra.gmra.mxu3 %v3136_v48 }
 0x1c3   : > { %1364 = vmatpush.msrb.mxu0 %v3368_v3  ;;  %1465 = vmatpush.msrb.mxu2 %v3376_v6  ;;  %v1440_v36 = vsub.f32 %v821_v42, %v3420_v54 }
 0x1c4   : > { %1264 = vmatpush.msra.mxu1 %v3241_v0  ;;  %1502 = vmatpush.msrb.mxu3 %v3359_v61  ;;  %v1412_v0 = vsub.f32 %v3387_v10, %v1411_v52 }
 0x1c5   : > { %1268 = vmatmul.f32.vlgmr.msra.gmra.mxu1 %v3183_v19  ;;  %1366 = vmatpush.msrb.mxu0 %v3378_v7  ;;  %v1441_v46 = vand.u32 4294901760, %v1440_v36 }
 0x1c6   : > { %1396 = vmatpush.msrb.mxu1 %v1395_v56  ;;  %1468 = vmatpush.msrb.mxu2 %v3387_v10  ;;  %v1413_v32 = vand.u32 4294901760, %v1412_v0 }
 0x1c7   : > { %1504 = vmatpush.msrb.mxu3 %v3368_v3  ;;  %1368 = vmatpush.msrb.mxu0 %v3389_v20  ;;  %v1442_v49 = vsub.f32 %v1440_v36, %v1441_v46 }
 0x1c8   : > { %1402 = vmatpush.msrb.mxu1 %v1401_v28  ;;  %1471 = vmatpush.msrb.mxu2 %v3400_v33 }
 0x1c9   : > { %1506 = vmatpush.msrb.mxu3 %v3378_v7  ;;  %1370 = vmatpush.msrb.mxu0 %v3402_v35  ;;  %v1443_v17 = vand.u32 4294901760, %v1442_v49 }
 0x1ca   : > { %1408 = vmatpush.msrb.mxu1 %v1407_v40  ;;  %1474 = vmatpush.msrb.mxu2 %v3413_v50 }
 0x1cb   : > { %1508 = vmatpush.msrb.mxu3 %v3389_v20  ;;  %1372 = vmatpush.msrb.mxu0 %v3415_v51 }
 0x1cc   : > { %1414 = vmatpush.msrb.mxu1 %v1413_v32  ;;  %1477 = vmatpush.msrb.mxu2 %v3428_v21 }
 0x1cd   : > { %1510 = vmatpush.msrb.mxu3 %v3402_v35  ;;  %1374 = vmatpush.msrb.mxu0 %v3420_v54 }
 0x1ce   : > { %1420 = vmatpush.msrb.mxu1 %v1419_v27  ;;  %1480 = vmatpush.msrb.mxu2 %v1434_v59 }
 0x1cf   : > { %1512 = vmatpush.msrb.mxu3 %v3415_v51  ;;  %1532 = vmatpush.msra.mxu0 %v1393_v8 }
 0x1d0   : > { %1426 = vmatpush.msrb.mxu1 %v1425_v15  ;;  %1483 = vmatpush.msrb.mxu2 %v1440_v36 }
 0x1d1   : > { %1514 = vmatpush.msrb.mxu3 %v3420_v54  ;;  %1536 = vmatpush.msra.mxu0 %v1399_v24 }
 0x1d2   : > { %1432 = vmatpush.msrb.mxu1 %v1431_v37  ;;  %1486 = vmatmul.f32.vlgmr.msrb.gmra.mxu2 %v3157_v1  ;;  %v2900_v1 = vmov 0  }
 0x1d3   : > { %1380 = vmatmul.f32.vlgmr.msrb.gmra.mxu0 %v3232_v55  ;;  %1518 = vmatmul.f32.vlgmr.msrb.gmra.mxu3 %v3183_v19  ;;  %v377_v19 = vlaneseq }
 0x1d4   : > { %1540 = vmatpush.msra.mxu0 %v1405_v38  ;;  %1438 = vmatpush.msrb.mxu1 %v1437_v12 }
 0x1d5   : > { %2861 = vset.pattern.permute.xlu0 %v2900_v1  ;;  %2862 = vset.pattern.permute.xlu1 %v2900_v1  ;;  %v3477_v55 = vand.u32 127, %v377_v19 }
 0x1d6   : > { %1544 = vmatpush.msra.mxu0 %v1411_v52  ;;  %1444 = vmatpush.msrb.mxu1 %v1443_v17 }
 0x1d7   : > { %1446 = vmatmul.f32.vlgmr.msrb.gmra.mxu1 %v3136_v48  ;;  %v3480_v29 = vadd.s32 128, %v3477_v55  ;;  %v384_v31 = vand.u32 65535, %v3477_v55  ;;  %v3486_v13 = vadd.s32 256, %v3477_v55 }
 0x1d8   : > { %1578 = vmatpush.msra.mxu1 %v3344_v39  ;;  %1548 = vmatpush.msra.mxu0 %v1417_v22 }
 0x1d9   : > { %v413_v58 = vand.u32 65535, %v3480_v29  ;;  %v414_v11 = vshrl.u32 %v3480_v29, 16  ;;  %v388_v5 = vmul.u32 58254, %v384_v31  ;;  %v442_v25 = vand.u32 65535, %v3486_v13 }
 0x1da   : > { %1580 = vmatpush.msra.mxu1 %v3349_v47  ;;  %1552 = vmatpush.msra.mxu0 %v1423_v60  ;;  %v443_v53 = vshrl.u32 %v3486_v13, 16 }
 0x1db   : > { %v417_v43 = vmul.u32 58254, %v413_v58  ;;  %v416_v39 = vmul.u32 14564, %v413_v58  ;;  %v418_v45 = vmul.u32 14564, %v414_v11  ;;  %v446_v57 = vmul.u32 58254, %v442_v25 }
 0x1dc   : > { %1582 = vmatpush.msra.mxu1 %v3359_v61  ;;  %1556 = vmatpush.msra.mxu0 %v1429_v23  ;;  %v387_v61 = vmul.u32 14564, %v384_v31  ;;  %v391_v2 = vshll.u32 %v388_v5, 16  ;;  %v445_v6 = vmul.u32 14564, %v442_v25  ;;  %v448_v50 = vmul.u32 58254, %v443_v53  ;;  %v487_v31 = vld [vmem:[%s352_s22] sm:$0xff] }
 0x1dd   : > { %v420_v47 = vshll.u32 %v417_v43, 16  ;;  %v449_v8 = vshll.u32 %v446_v57, 16  ;;  %v421_v21 = vshrl.u32 %v417_v43, 16  ;;  %v392_v0 = vshrl.u32 %v388_v5, 16  ;;  %1645 = vperm.xlu0 %2861, %v487_v31  }
 0x1de   : > { %1584 = vmatpush.msra.mxu1 %v3368_v3  ;;  %1560 = vmatpush.msra.mxu0 %v1435_v16  ;;  %v422_v3 = vshll.u32 %v418_v45, 16  ;;  %vm395_vm14 = vc.u32 %v387_v61, %v391_v2  ;;  %v397_v10 = vadd.s32 %v391_v2, %v387_v61  ;;  %v423_v34 = vshrl.u32 %v418_v45, 16  ;;  %v488_v61 = vld [vmem:[%s358_s25] sm:$0xff] }
 0x1df   : > { %vm424_vm13 = vc.u32 %v416_v39, %v420_v47  ;;  %v426_v4 = vadd.s32 %v420_v47, %v416_v39  ;;  %v396_v30 = vsel %vm395_vm14, 1, %v2900_v1  ;;  %vm453_vm0 = vc.u32 %v445_v6, %v449_v8 }
 0x1e0   : > { %1586 = vmatpush.msra.mxu1 %v3378_v7  ;;  %1564 = vmatpush.msra.mxu0 %v1441_v46  ;;  %v447_v7 = vmul.u32 14564, %v443_v53  ;;  %v425_v24 = vsel %vm424_vm13, 1, %v2900_v1  ;;  %v450_v23 = vshrl.u32 %v446_v57, 16 }
 0x1e1   : > { %1566 = vmatmul.f32.vlgmr.msra.gmra.mxu0 %v3136_v48  ;;  %vm428_vm15 = vc.u32 %v426_v4, %v422_v3 }
 0x1e2   : > { %1588 = vmatpush.msra.mxu1 %v3389_v20  ;;  %v419_v20 = vmul.u32 58254, %v414_v11  ;;  %v451_v33 = vshll.u32 %v447_v7, 16  ;;  %v429_v44 = vsel %vm428_vm15, 1, %v2900_v1  ;;  %v452_v18 = vshrl.u32 %v447_v7, 16 }
 0x1e4   : > { %1590 = vmatpush.msra.mxu1 %v3402_v35  ;;  %v455_v35 = vadd.s32 %v449_v8, %v445_v6  ;;  %v427_v42 = vadd.s32 %v425_v24, %v419_v20 }
 0x1e5   : > { %1653 = vperm.xlu0 %2861, %v488_v61  }
 0x1e6   : > { %1592 = vmatpush.msra.mxu1 %v3415_v51  ;;  %vm457_vm2 = vc.u32 %v455_v35, %v451_v33  ;;  %v431_v22 = vadd.s32 %v429_v44, %v427_v42 }
 0x1e7   : > { %v458_v60 = vsel %vm457_vm2, 1, %v2900_v1 }
 0x1e8   : > { %1594 = vmatpush.msra.mxu1 %v3420_v54  ;;  %v454_v54 = vsel %vm453_vm0, 1, %v2900_v1  ;;  %v432_v36 = vadd.s32 %v431_v22, %v421_v21 }
 0x1e9   : > { %1596 = vmatmul.f32.vlgmr.msra.gmra.mxu1 %v3136_v48  ;;  %v385_v48 = vshrl.u32 %v3477_v55, 16  ;;  %v456_v28 = vadd.s32 %v454_v54, %v448_v50 }
 0x1ea   : > { %v433_v15 = vadd.s32 %v432_v36, %v423_v34 }
 0x1eb   : > { %v389_v63 = vmul.u32 14564, %v385_v48  ;;  %v390_v26 = vmul.u32 58254, %v385_v48  ;;  %v460_v32 = vadd.s32 %v458_v60, %v456_v28 }
 0x1ec   : > { %v434_v17 = vshrl.u32 %v433_v15, 4 }
 0x1ed   : > { %v393_v9 = vshll.u32 %v389_v63, 16  ;;  %v398_v52 = vadd.s32 %v396_v30, %v390_v26  ;;  %v394_v14 = vshrl.u32 %v389_v63, 16  ;;  %v461_v37 = vadd.s32 %v460_v32, %v450_v23 }
 0x1ee   : > { %v435_v48 = vmul.u32 18, %v434_v17 }
 0x1ef   : > { %vm399_vm1 = vc.u32 %v397_v10, %v393_v9 }
 0x1f0   : > { %v400_v56 = vsel %vm399_vm1, 1, %v2900_v1  ;;  %v462_v1 = vadd.s32 %v461_v37, %v452_v18  ;;  %v436_v53 = vsub.s32 %v3480_v29, %v435_v48 }
 0x1f1   : > { %v402_v59 = vadd.s32 %v400_v56, %v398_v52 }
 0x1f2   : > { %v463_v5 = vshrl.u32 %v462_v1, 4  ;;  %vm469_vm13 = vcmp.ne.s32.totalorder %v436_v53, 0  ;;  %vm472_vm14 = vcmp.lt.s32.totalorder %v436_v53, 0  ;;  %v478_v20 = vadd.s32 18, %v436_v53 }
 0x1f3   : > { %v403_v16 = vadd.s32 %v402_v59, %v392_v0  ;;  %vm475_vm1 = vmand %vm472_vm14, %vm469_vm13 }
 0x1f4   : > { %v464_v57 = vmul.u32 18, %v463_v5  ;;  %v481_v33 = vsel %vm475_vm1, %v478_v20, %v436_v53  ;;  %vm1686_vm1 = vcmask 416768  }
 0x1f5   : > { %v404_v49 = vadd.s32 %v403_v16, %v394_v14  ;;  %vm3504_vm6 = vcmp.lt.s32.totalorder %v481_v33, 16 }
 0x1f6   : > { %v465_v9 = vsub.s32 %v3486_v13, %v464_v57 }
 0x1f7   : > { %v405_v19 = vshrl.u32 %v404_v49, 4 }
 0x1f8   : > { %vm470_vm12 = vcmp.ne.s32.totalorder %v465_v9, 0  ;;  %vm473_vm8 = vcmp.lt.s32.totalorder %v465_v9, 0 }
 0x1f9   : > { %v406_v39 = vmul.u32 18, %v405_v19  ;;  %vm476_vm10 = vmand %vm473_vm8, %vm470_vm12 }
 0x1fb   : > { %v407_v2 = vsub.s32 %v3477_v55, %v406_v39 }
 0x1fd   : > { %vm468_vm15 = vcmp.ne.s32.totalorder %v407_v2, 0  ;;  %vm471_vm0 = vcmp.lt.s32.totalorder %v407_v2, 0  ;;  %v477_v24 = vadd.s32 18, %v407_v2 }
 0x1fe   : > { %vm474_vm2 = vmand %vm471_vm0, %vm468_vm15  ;;  %vm1683_vm15 = vcmask 1047704   ;;  %vm1677_vm0 = vcmask 154624  }
 0x1ff   : > { %v480_v42 = vsel %vm474_vm2, %v477_v24, %v407_v2  ;;  %vm4058_vm2 = vcmask 891904  }
 0x200   : > { %vm3508_vm13 = vcmp.lt.s32.totalorder %v480_v42, 16 }
 0x211   : > { %v881_v51 = vpop.f32.mrf.mxu0 }
 0x21b   : > { %v987_v62 = vpop.f32.mrf.mxu2 }
 0x223   : > { %v1019_v40 = vpop.f32.mrf.mxu3 }
 0x22a   : > { %v947_v38 = vpop.f32.mrf.mxu1 }
 0x22b   : > { %v948_v25 = vadd.f32 %v947_v38, %v881_v51  ;;  %v479_v38 = vadd.s32 18, %v465_v9 }
 0x22d   : > { %v988_v63 = vadd.f32 %v987_v62, %v948_v25  ;;  %v482_v56 = vsel %vm476_vm10, %v479_v38, %v465_v9 }
 0x22e   : > { %vm3516_vm8 = vcmp.lt.s32.totalorder %v482_v56, 16 }
 0x22f   : > { %v1020_v10 = vadd.f32 %v1019_v40, %v988_v63 }
 0x230   : > { %v1067_v41 = vpop.f32.mrf.mxu0 }
 0x231   : > { %v1068_v30 = vadd.f32 %v1067_v41, %v1020_v10 }
 0x233   : > { %v1097_v27 = vpop.f32.mrf.mxu1 }
 0x234   : > { %v1098_v51 = vadd.f32 %v1097_v27, %v1068_v30 }
 0x236   : > { %v1606_v22 = vsel %vm3508_vm13, %v1098_v51, 0.0 }
 0x237   : > { %v1614_v40 = vmul.f32 %v1606_v22, %v1606_v22 }
 0x239   : > { %v1131_v46 = vpop.f32.mrf.mxu2 }
 0x23b   : > { %v1197_v12 = vpop.f32.mrf.mxu3 }
 0x23c   : > { %v1198_v11 = vadd.f32 %v1197_v12, %v1131_v46 }
 0x23f   : > { %v1237_v43 = vpop.f32.mrf.mxu0 }
 0x240   : > { %v1238_v47 = vadd.f32 %v1237_v43, %v1198_v11 }
 0x242   : > { %v1269_v58 = vpop.f32.mrf.mxu1  ;;  %v1317_v45 = vpop.f32.mrf.mxu2 }
 0x243   : > { %v1270_v6 = vadd.f32 %v1269_v58, %v1238_v47 }
 0x245   : > { %v1347_v3 = vpop.f32.mrf.mxu3  ;;  %v1318_v26 = vadd.f32 %v1317_v45, %v1270_v6 }
 0x247   : > { %v1348_v44 = vadd.f32 %v1347_v3, %v1318_v26 }
 0x249   : > { %v1607_v62 = vsel %vm3504_vm6, %v1348_v44, 0.0 }
 0x24a   : > { %v1615_v59 = vmul.f32 %v1607_v62, %v1607_v62  ;;  %v1609_v36 = vadd.f32 %v1607_v62, %v1606_v22 }
 0x24c   : > { %v1617_v16 = vadd.f32 %v1615_v59, %v1614_v40 }
 0x24f   : > { %v1646_v11 = vpop.permute.xlu0 %1645 }
 0x250   : > { %v1381_v7 = vpop.f32.mrf.mxu0 }
 0x254   : > { %v1447_v4 = vpop.f32.mrf.mxu1 }
 0x255   : > { %v1448_v8 = vadd.f32 %v1447_v4, %v1381_v7  ;;  %v1487_v29 = vpop.f32.mrf.mxu2 }
 0x256   : > { %v1519_v35 = vpop.f32.mrf.mxu3 }
 0x257   : > { %v1488_v55 = vadd.f32 %v1487_v29, %v1448_v8  ;;  %v1654_v3 = vpop.permute.xlu0 %1653 }
 0x259   : > { %v1520_v50 = vadd.f32 %v1519_v35, %v1488_v55 }
 0x25e   : > { %v1567_v52 = vpop.f32.mrf.mxu0 }
 0x25f   : > { %v1568_v21 = vadd.f32 %v1567_v52, %v1520_v50 }
 0x266   : > { %v1597_v0 = vpop.f32.mrf.mxu1 }
 0x267   : > { %v1598_v60 = vadd.f32 %v1597_v0, %v1568_v21 }
 0x269   : > { %v1608_v34 = vsel %vm3516_vm8, %v1598_v60, 0.0 }
 0x26a   : > { %v1616_v23 = vmul.f32 %v1608_v34, %v1608_v34  ;;  %v1610_v32 = vsel %vm649_vm3, %v1608_v34, 0.0 }
 0x26b   : > { %v1611_v14 = vadd.f32 %v1610_v32, %v1609_v36 }
 0x26c   : > { %v1618_v27 = vsel %vm649_vm3, %v1616_v23, 0.0 }
 0x26d   : > { %1612 = vadd.xlane.f32.xlu1 %v1611_v14  ;;  %v1619_v41 = vadd.f32 %v1618_v27, %v1617_v16 }
 0x26f   : > { %1620 = vadd.xlane.f32.xlu2 %v1619_v41 }
 0x2e0   : > { %v1613_v46 = vpop.xlane.xlu1 %1612 }
 0x2e1   : > { %v1622_v15 = vmul.f32 0.00390625, %v1613_v46 }
 0x2e2   : > { %v1621_v18 = vpop.xlane.xlu2 %1620 }
 0x2e3   : > { %v1623_v37 = vmul.f32 0.00390625, %v1621_v18  ;;  %v1624_v49 = vmul.f32 %v1622_v15, %v1622_v15  ;;  %v1626_v5 = vsub.f32 %v1098_v51, %v1622_v15  ;;  %v1627_v25 = vsub.f32 %v1348_v44, %v1622_v15 }
 0x2e4   : > { %v1628_v39 = vsub.f32 %v1598_v60, %v1622_v15 }
 0x2e5   : > { %v1625_v12 = vsub.f32 %v1623_v37, %v1624_v49 }
 0x2e7   : > { %v1629_v17 = vadd.f32 1e-05, %v1625_v12 }
 0x2e9   : > { %2863 = vrsqrt.f32 %v1629_v17  ;;  %vm1636_vm12 = vweird.f32 %v1629_v17 }
 0x2ef   : > { %v2864_v1 = vpop.eup %2863 }
 0x2f0   : > { %v1631_v19 = vmul.f32 %v2864_v1, %v1629_v17  ;;  %vm1637_vm10 = vweird.f32 %v2864_v1 }
 0x2f1   : > { %vm1638_vm14 = vmor %vm1636_vm12, %vm1637_vm10  ;;  %vm4060_vm12 = vcmask 1039360  }
 0x2f2   : > { %v1632_v58 = vmul.f32 %v2864_v1, %v1631_v19  ;;  %vm4059_vm10 = vmmov %vm4058_vm2 }
 0x2f4   : > { %v1633_v31 = vmul.f32 0.5, %v1632_v58 }
 0x2f6   : > { %v1634_v43 = vsub.f32 1.5, %v1633_v31 }
 0x2f8   : > { %v1635_v48 = vmul.f32 %v2864_v1, %v1634_v43 }
 0x2fa   : > { %v1639_v45 = vsel %vm1638_vm14, %v2864_v1, %v1635_v48  ;;  %vm4061_vm14 = vmmov %vm4060_vm12 }
 0x2fb   : > { %v1640_v47 = vmul.f32 %v1639_v45, %v1626_v5  ;;  %v1641_v53 = vmul.f32 %v1639_v45, %v1627_v25  ;;  %v1642_v57 = vmul.f32 %v1639_v45, %v1628_v39  ;;  %v489_v5 = vld [vmem:[%s4041_s5] sm:$0xff] }
 0x2fd   : > { %v1648_v61 = vmul.f32 %v1646_v11, %v1640_v47  ;;  %v1649_v63 = vmul.f32 %v1646_v11, %v1641_v53  ;;  %v1650_v2 = vmul.f32 %v1646_v11, %v1642_v57 }
 0x2ff   : > { %v1656_v4 = vadd.f32 %v1654_v3, %v1648_v61  ;;  %v1658_v6 = vadd.f32 %v1654_v3, %v1650_v2  ;;  %v1657_v7 = vadd.f32 %v1654_v3, %v1649_v63 }
 0x301   : > { %v1659_v8 = vmul.f32 0.01, %v1656_v4  ;;  %v1661_v9 = vmul.f32 0.01, %v1658_v6  ;;  %v1660_v29 = vmul.f32 0.01, %v1657_v7 }
 0x303   : > { %v1664_v10 = vmax.f32 %v1658_v6, %v1661_v9  ;;  %v1662_v20 = vmax.f32 %v1656_v4, %v1659_v8  ;;  %v1663_v55 = vmax.f32 %v1657_v7, %v1660_v29 }
 0x305   : > { %v1667_v24 = vsel %vm3516_vm8, %v1664_v10, 0.0  ;;  %v1665_v26 = vsel %vm3508_vm13, %v1662_v20, 0.0  ;;  %v1666_v30 = vsel %vm3504_vm6, %v1663_v55, 0.0 }
 0x306   : > { %1675 = vrot.lane.b32.xlu2 %v1667_v24, %s2875_s12  ;;  %1671 = vrot.lane.b32.xlu0 %v1665_v26, %s2875_s12 }
 0x30e   : > { %1673 = vrot.lane.b32.xlu0 %v1666_v30, %s2875_s12 }
 0x360   : > { %v1676_v35 = vpop.permute.xlu2 %1675 }
 0x378   : > { %v1672_v33 = vpop.permute.xlu0 %1671 }
 0x379   : > { %1684 = vst.msk [vmem:[#allocation3] sm:$0xff] %vm1683_vm15, %v1672_v33 }
 0x380   : > { %v1674_v38 = vpop.permute.xlu0 %1673  ;;  %v3533_v42 = vld [vmem:[#allocation3] sm:$0xff] }
 0x381   : > { %v3535_v44 = vsel %vm1677_vm0, %v1672_v33, %v1674_v38  ;;  %v1679_v50 = vsel %vm1677_vm0, %v1674_v38, %v1676_v35  ;;  %1840 = vrot.lane.b32.xlu1 %v3533_v42, %s2893_s0  ;;  %1820 = vrot.lane.b32.xlu0 %v3533_v42, %s2892_s28 }
 0x382   : > { %1685 = vst [vmem:[#allocation3 + $0x8] sm:$0xff] %v3535_v44  ;;  %1800 = vrot.lane.b32.xlu2 %v3533_v42, %s2894_s9 }
 0x383   : > { %1687 = vst.msk [vmem:[#allocation3 + $0x10] sm:$0xff] %vm1686_vm1, %v1679_v50 }
 0x389   : > { %1780 = vrot.lane.b32.xlu0 %v3533_v42, %s2896_s11  ;;  %1760 = vrot.lane.b32.xlu1 %v3533_v42, %s2895_s10 }
 0x38a   : > { %1740 = vrot.lane.b32.xlu2 %v3533_v42, %s2897_s13  ;;  %v1836_v51 = vld [vmem:[#allocation3 + $0x10] sm:$0xff] }
 0x38b   : > { %1693 = vst.msk [vmem:[#allocation2 + $0x10] sm:$0xff] %vm649_vm3, %v1836_v51 }
 0x391   : > { %1720 = vrot.lane.b32.xlu0 %v3533_v42, %s2898_s14  ;;  %1700 = vrot.lane.b32.xlu1 %v3533_v42, %s2899_s15 }
 0x392   : > { %1782 = vrot.lane.b32.xlu2 %v3535_v44, %s2896_s11 }
 0x399   : > { %1842 = vrot.lane.b32.xlu0 %v3535_v44, %s2893_s0  ;;  %1802 = vrot.lane.b32.xlu1 %v3535_v44, %s2894_s9 }
 0x39a   : > { %1722 = vrot.lane.b32.xlu2 %v3535_v44, %s2898_s14 }
 0x3a1   : > { %1822 = vrot.lane.b32.xlu0 %v3535_v44, %s2892_s28  ;;  %1742 = vrot.lane.b32.xlu1 %v3535_v44, %s2897_s13 }
 0x3a2   : > { %1844 = vrot.lane.b32.xlu2 %v1836_v51, %s2893_s0 }
 0x3a9   : > { %1762 = vrot.lane.b32.xlu0 %v3535_v44, %s2895_s10  ;;  %1824 = vrot.lane.b32.xlu1 %v1836_v51, %s2892_s28  ;;  %s2820_s28 = sshll.u32 %s4067_s27, 3 }
 0x3aa   : > { %1784 = vrot.lane.b32.xlu2 %v1836_v51, %s2896_s11 }
 0x3b1   : > { %1764 = vrot.lane.b32.xlu1 %v1836_v51, %s2895_s10  ;;  %1702 = vrot.lane.b32.xlu0 %v3535_v44, %s2899_s15  ;;  %s364_s10 = scalar_lea.vmem %s4042_s6, %s2820_s28 }
 0x3b2   : > { %1724 = vrot.lane.b32.xlu2 %v1836_v51, %s2898_s14  ;;  %s370_s14 = scalar_lea.vmem %s4043_s7, %s2820_s28 }
 0x3b9   : > { %1704 = vrot.lane.b32.xlu1 %v1836_v51, %s2899_s15  ;;  %1804 = vrot.lane.b32.xlu0 %v1836_v51, %s2894_s9  ;;  %s2826_s15 = smul.u32 24, %s4063_s30 }
 0x3bb   : > { %s376_s18 = scalar_lea.vmem %s4044_s8, %s2826_s15 }
 0x3c1   : > { %1744 = vrot.lane.b32.xlu0 %v1836_v51, %s2897_s13 }
 0x3dc   : > { %v1801_v52 = vpop.permute.xlu2 %1800 }
 0x3e4   : > { %v1741_v56 = vpop.permute.xlu2 %1740 }
 0x3ec   : > { %v1783_v62 = vpop.permute.xlu2 %1782 }
 0x3f3   : > { %v1841_v21 = vpop.permute.xlu1 %1840  ;;  %v1821_v22 = vpop.permute.xlu0 %1820 }
 0x3f4   : > { %v1723_v0 = vpop.permute.xlu2 %1722 }
 0x3fb   : > { %v1761_v59 = vpop.permute.xlu1 %1760  ;;  %v1781_v60 = vpop.permute.xlu0 %1780 }
 0x3fc   : > { %v1845_v40 = vpop.permute.xlu2 %1844  ;;  %v1786_v34 = vsel %vm747_vm5, %v1781_v60, %v1783_v62 }
 0x3fd   : > { %1853 = vst.msk [vmem:[#allocation2 + $0xd0] sm:$0xff] %vm649_vm3, %v1845_v40  ;;  %v3607_v19 = vand.u32 4294901760, %v1786_v34 }
 0x3ff   : > { %v3626_v45 = vsub.f32 %v1786_v34, %v3607_v19 }
 0x401   : > { %v1945_v3 = vand.u32 4294901760, %v3626_v45 }
 0x403   : > { %v3581_v36 = vpop.permute.xlu1 %1700  ;;  %v1721_v23 = vpop.permute.xlu0 %1720  ;;  %v1946_v30 = vsub.f32 %v3626_v45, %v1945_v3 }
 0x404   : > { %v1785_v32 = vpop.permute.xlu2 %1784  ;;  %v1726_v14 = vsel %vm684_vm11, %v1721_v23, %v1723_v0 }
 0x405   : > { %v3585_v16 = vsel %vm747_vm5, %v1783_v62, %v1785_v32  ;;  %1793 = vst.msk [vmem:[#allocation2 + $0x88] sm:$0xff] %vm649_vm3, %v1785_v32  ;;  %vm4056_vm5 = vcmask 588800   ;;  %v3648_v8 = vand.u32 4294901760, %v1726_v14 }
 0x406   : > { %v1882_v57 = vsel %vm4056_vm5, %v489_v5, 0 }
 0x407   : > { %v3645_v7 = vand.u32 4294901760, %v1882_v57  ;;  %v3677_v51 = vsub.f32 %v1726_v14, %v3648_v8 }
 0x409   : > { %v1963_v34 = vand.u32 4294901760, %v3677_v51 }
 0x40b   : > { %v3588_v27 = vpop.permute.xlu1 %1802  ;;  %v1843_v41 = vpop.permute.xlu0 %1842 }
 0x40c   : > { %v1806_v46 = vsel %vm768_vm7, %v1801_v52, %v3588_v27  ;;  %v1725_v15 = vpop.permute.xlu2 %1724  ;;  %v1846_v18 = vsel %vm810_vm4, %v1841_v21, %v1843_v41  ;;  %v1847_v12 = vsel %vm810_vm4, %v1843_v41, %v1845_v40  ;;  %vm4055_vm4 = vcmask 744448  }
 0x40d   : > { %v3594_v37 = vsel %vm684_vm11, %v1723_v0, %v1725_v15  ;;  %v3596_v49 = vand.u32 4294901760, %v1846_v18  ;;  %1733 = vst.msk [vmem:[#allocation2 + $0x40] sm:$0xff] %vm649_vm3, %v1725_v15  ;;  %v3605_v1 = vand.u32 4294901760, %v1806_v46  ;;  %v3643_v6 = vand.u32 4294901760, %v1847_v12  ;;  %vm4057_vm11 = vmmov %vm4055_vm4 }
 0x40e   : > { %v3680_v52 = vsub.f32 %v1882_v57, %v3645_v7  ;;  %v3687_v21 = vand.u32 4294901760, %v3533_v42 }
 0x40f   : > { %1892 = vmatpush.msra.mxu2 %v3596_v49  ;;  %2032 = vmatpush.msrb.mxu1 %v3596_v49  ;;  %v3603_v17 = vsub.f32 %v1846_v18, %v3596_v49  ;;  %v3617_v48 = vsub.f32 %v1806_v46, %v3605_v1  ;;  %v3672_v38 = vsub.f32 %v1847_v12, %v3643_v6 }
 0x410   : > { %v3701_v23 = vand.u32 4294901760, %v3680_v52  ;;  %v3712_v15 = vsub.f32 %v3533_v42, %v3687_v21 }
 0x411   : > { %1993 = vmatpush.msrb.mxu0 %v3603_v17  ;;  %v1927_v58 = vand.u32 4294901760, %v3603_v17  ;;  %v1939_v2 = vand.u32 4294901760, %v3617_v48  ;;  %v2177_v40 = vand.u32 4294901760, %v3672_v38 }
 0x412   : > { %v1975_v57 = vand.u32 4294901760, %v3712_v15 }
 0x413   : > { %v3611_v31 = vpop.permute.xlu1 %1742  ;;  %v1823_v11 = vpop.permute.xlu0 %1822  ;;  %v1928_v43 = vsub.f32 %v3603_v17, %v1927_v58  ;;  %v1940_v29 = vsub.f32 %v3617_v48, %v1939_v2  ;;  %v2178_v42 = vsub.f32 %v3672_v38, %v2177_v40 }
 0x414   : > { %v1746_v25 = vsel %vm705_vm9, %v1741_v56, %v3611_v31  ;;  %v1826_v39 = vsel %vm4055_vm4, %v1821_v22, %v1823_v11 }
 0x415   : > { %v3628_v47 = vand.u32 4294901760, %v1826_v39  ;;  %v1929_v53 = vand.u32 4294901760, %v1928_v43  ;;  %v3635_v63 = vand.u32 4294901760, %v1746_v25  ;;  %v1941_v56 = vand.u32 4294901760, %v1940_v29 }
 0x417   : > { %1894 = vmatpush.msra.mxu2 %v3628_v47  ;;  %1930 = vmatpush.msra.mxu3 %v1929_v53  ;;  %v3633_v61 = vsub.f32 %v1826_v39, %v3628_v47  ;;  %v3659_v24 = vsub.f32 %v1746_v25, %v3635_v63  ;;  %v1964_v25 = vsub.f32 %v3677_v51, %v1963_v34 }
 0x418   : > { %2034 = vmatpush.msrb.mxu1 %v3628_v47 }
 0x419   : > { %1896 = vmatpush.msra.mxu2 %v3605_v1  ;;  %1996 = vmatpush.msrb.mxu0 %v3633_v61  ;;  %v1933_v4 = vand.u32 4294901760, %v3633_v61  ;;  %v1957_v22 = vand.u32 4294901760, %v3659_v24 }
 0x41a   : > { %2036 = vmatpush.msrb.mxu1 %v3605_v1 }
 0x41b   : > { %v1825_v9 = vpop.permute.xlu1 %1824  ;;  %v1763_v10 = vpop.permute.xlu0 %1762  ;;  %1898 = vmatpush.msra.mxu2 %v3607_v19  ;;  %1999 = vmatpush.msrb.mxu0 %v3617_v48  ;;  %v1934_v20 = vsub.f32 %v3633_v61, %v1933_v4  ;;  %v1958_v46 = vsub.f32 %v3659_v24, %v1957_v22 }
 0x41c   : > { %v1827_v26 = vsel %vm4057_vm11, %v1823_v11, %v1825_v9  ;;  %1833 = vst.msk [vmem:[#allocation2 + $0xb8] sm:$0xff] %vm649_vm3, %v1825_v9  ;;  %v1766_v55 = vsel %vm4058_vm2, %v1761_v59, %v1763_v10  ;;  %2038 = vmatpush.msrb.mxu1 %v3607_v19  ;;  %v1947_v59 = vand.u32 4294901760, %v1946_v30  ;;  %v3738_v9 = vand.u32 4294901760, %v3585_v16 }
 0x41d   : > { %2002 = vmatpush.msrb.mxu0 %v3626_v45  ;;  %v3669_v33 = vand.u32 4294901760, %v1766_v55  ;;  %v1935_v35 = vand.u32 4294901760, %v1934_v20  ;;  %v3674_v50 = vand.u32 4294901760, %v1827_v26  ;;  %v1959_v39 = vand.u32 4294901760, %v1958_v46 }
 0x41e   : > { %v2179_v20 = vand.u32 4294901760, %v2178_v42 }
 0x41f   : > { %1900 = vmatpush.msra.mxu2 %v3669_v33  ;;  %1936 = vmatpush.msra.mxu3 %v1935_v35  ;;  %v3684_v62 = vsub.f32 %v1766_v55, %v3669_v33  ;;  %v3692_v0 = vsub.f32 %v1827_v26, %v3674_v50  ;;  %v1965_v26 = vand.u32 4294901760, %v1964_v25 }
 0x420   : > { %2040 = vmatpush.msrb.mxu1 %v3669_v33 }
 0x421   : > { %1902 = vmatpush.msra.mxu2 %v3635_v63  ;;  %1942 = vmatpush.msra.mxu3 %v1941_v56  ;;  %v1951_v60 = vand.u32 4294901760, %v3684_v62  ;;  %v2183_v11 = vand.u32 4294901760, %v3692_v0 }
 0x422   : > { %2005 = vmatpush.msrb.mxu0 %v3684_v62  ;;  %2042 = vmatpush.msrb.mxu1 %v3635_v63 }
 0x423   : > { %v1765_v32 = vpop.permute.xlu1 %1764  ;;  %v1703_v14 = vpop.permute.xlu0 %1702  ;;  %1904 = vmatpush.msra.mxu2 %v3648_v8  ;;  %1948 = vmatpush.msra.mxu3 %v1947_v59  ;;  %v1952_v41 = vsub.f32 %v3684_v62, %v1951_v60 }
 0x424   : > { %v1767_v18 = vsel %vm4059_vm10, %v1763_v10, %v1765_v32  ;;  %1773 = vst.msk [vmem:[#allocation2 + $0x70] sm:$0xff] %vm649_vm3, %v1765_v32  ;;  %v1706_v12 = vsel %vm4060_vm12, %v3581_v36, %v1703_v14  ;;  %2008 = vmatpush.msrb.mxu0 %v3659_v24  ;;  %2044 = vmatpush.msrb.mxu1 %v3648_v8 }
 0x425   : > { %v3721_v43 = vand.u32 4294901760, %v1706_v12  ;;  %v1953_v5 = vand.u32 4294901760, %v1952_v41  ;;  %v1912_v36 = vsub.f32 %v3680_v52, %v3701_v23  ;;  %v2184_v10 = vsub.f32 %v3692_v0, %v2183_v11 }
 0x426   : > { %2011 = vmatpush.msrb.mxu0 %v3677_v51  ;;  %v3748_v55 = vand.u32 4294901760, %v1767_v18  ;;  %v1976_v32 = vsub.f32 %v3712_v15, %v1975_v57  ;;  %v3762_v41 = vsub.f32 %v3585_v16, %v3738_v9 }
 0x427   : > { %1906 = vmatpush.msra.mxu2 %v3721_v43  ;;  %1954 = vmatpush.msra.mxu3 %v1953_v5  ;;  %v3734_v53 = vsub.f32 %v1706_v12, %v3721_v43  ;;  %v3750_v30 = vand.u32 4294901760, %v1912_v36 }
 0x428   : > { %2046 = vmatpush.msrb.mxu1 %v3721_v43  ;;  %v3776_v16 = vsub.f32 %v1767_v18, %v3748_v55  ;;  %v1977_v61 = vand.u32 4294901760, %v1976_v32 }
 0x429   : > { %1908 = vmatpush.msra.mxu2 %v3687_v21  ;;  %1960 = vmatpush.msra.mxu3 %v1959_v39  ;;  %v1969_v29 = vand.u32 4294901760, %v3734_v53 }
 0x42a   : > { %2014 = vmatpush.msrb.mxu0 %v3734_v53  ;;  %2048 = vmatpush.msrb.mxu1 %v3687_v21  ;;  %v2201_v18 = vand.u32 4294901760, %v3776_v16 }
 0x42b   : > { %v1705_v35 = vpop.permute.xlu1 %1704  ;;  %v1805_v56 = vpop.permute.xlu0 %1804  ;;  %2066 = vmatpush.msrb.mxu2 %v1927_v58  ;;  %v1970_v59 = vsub.f32 %v3734_v53, %v1969_v29  ;;  %1966 = vmatpush.msra.mxu3 %v1965_v26  ;;  %v2185_v58 = vand.u32 4294901760, %v2184_v10 }
 0x42c   : > { %2180 = vmatpush.msra.mxu1 %v2179_v20  ;;  %v1707_v46 = vsel %vm4061_vm14, %v1703_v14, %v1705_v35  ;;  %1713 = vst.msk [vmem:[#allocation2 + $0x28] sm:$0xff] %vm649_vm3, %v1705_v35  ;;  %v1807_v17 = vsel %vm768_vm7, %v3588_v27, %v1805_v56  ;;  %2017 = vmatpush.msrb.mxu0 %v3712_v15  ;;  %v2195_v14 = vand.u32 4294901760, %v3762_v41  ;;  %v1871_v20 = vld [vmem:[#allocation2 + $0x88] sm:$0xff] }
 0x42d   : > { %2070 = vmatpush.msrb.mxu2 %v1933_v4  ;;  %v1971_v12 = vand.u32 4294901760, %v1970_v59  ;;  %v3772_v5 = vand.u32 4294901760, %v1807_v17  ;;  %1813 = vst.msk [vmem:[#allocation2 + $0xa0] sm:$0xff] %vm649_vm3, %v1805_v56  ;;  %v3786_v4 = vand.u32 4294901760, %v3594_v37  ;;  %2020 = vmatmul.f32.vlgmr.msrb.gmra.mxu0 %v3680_v52  ;;  %v2202_v36 = vsub.f32 %v3776_v16, %v2201_v18 }
 0x42e   : > { %2142 = vmatpush.msra.mxu0 %v3643_v6  ;;  %2186 = vmatpush.msra.mxu1 %v2185_v58  ;;  %v2196_v62 = vsub.f32 %v3762_v41, %v2195_v14  ;;  %v3899_v26 = vand.u32 4294901760, %v1871_v20 }
 0x42f   : > { %1914 = vmatmul.f32.vlgmr.msra.gmra.mxu2 %v3750_v30  ;;  %v3783_v27 = vsub.f32 %v1807_v17, %v3772_v5  ;;  %1972 = vmatpush.msra.mxu3 %v1971_v12 }
 0x430   : > { %2074 = vmatpush.msrb.mxu2 %v1939_v2  ;;  %2144 = vmatpush.msra.mxu0 %v3674_v50  ;;  %v3794_v2 = vand.u32 4294901760, %v1707_v46 }
 0x431   : > { %v2189_v48 = vand.u32 4294901760, %v3783_v27  ;;  %1978 = vmatpush.msra.mxu3 %v1977_v61  ;;  %2052 = vmatmul.f32.vlgmr.msrb.gmra.mxu1 %v3701_v23 }
 0x432   : > { %2078 = vmatpush.msrb.mxu2 %v1945_v3  ;;  %2146 = vmatpush.msra.mxu0 %v3772_v5  ;;  %v3805_v3 = vand.u32 4294901760, %v3535_v44  ;;  %v3829_v39 = vsub.f32 %v1707_v46, %v3794_v2  ;;  %v1862_v46 = vld [vmem:[#allocation2 + $0x40] sm:$0xff] }
 0x433   : > { %v1745_v42 = vpop.permute.xlu0 %1744  ;;  %2112 = vmatpush.msrb.mxu3 %v3596_v49  ;;  %v2190_v45 = vsub.f32 %v3783_v27, %v2189_v48  ;;  %v3817_v49 = vsub.f32 %v3594_v37, %v3786_v4 }
 0x434   : > { %2082 = vmatpush.msrb.mxu2 %v1951_v60  ;;  %v1747_v25 = vsel %vm705_vm9, %v3611_v31, %v1745_v42  ;;  %1753 = vst.msk [vmem:[#allocation2 + $0x58] sm:$0xff] %vm649_vm3, %v1745_v42  ;;  %2148 = vmatpush.msra.mxu0 %v3738_v9 }
 0x435   : > { %1980 = vmatmul.f32.vlgmr.msra.gmra.mxu3 %v3645_v7  ;;  %v3822_v31 = vand.u32 4294901760, %v1747_v25  ;;  %v2191_v60 = vand.u32 4294901760, %v2190_v45  ;;  %v2213_v24 = vand.u32 4294901760, %v3817_v49 }
 0x436   : > { %2086 = vmatpush.msrb.mxu2 %v1957_v22  ;;  %2114 = vmatpush.msrb.mxu3 %v3628_v47  ;;  %v2197_v47 = vand.u32 4294901760, %v2196_v62  ;;  %v3839_v22 = vsub.f32 %v3535_v44, %v3805_v3 }
 0x437   : > { %2150 = vmatpush.msra.mxu0 %v3748_v55  ;;  %v2206_v37 = vsub.f32 %v1747_v25, %v3822_v31  ;;  %2192 = vmatpush.msra.mxu1 %v2191_v60  ;;  %v2214_v44 = vsub.f32 %v3817_v49, %v2213_v24 }
 0x438   : > { %2090 = vmatpush.msrb.mxu2 %v1963_v34  ;;  %2116 = vmatpush.msrb.mxu3 %v3605_v1  ;;  %v2203_v1 = vand.u32 4294901760, %v2202_v36  ;;  %v2219_v34 = vand.u32 4294901760, %v3829_v39 }
 0x439   : > { %2152 = vmatpush.msra.mxu0 %v3822_v31  ;;  %v2207_v51 = vand.u32 4294901760, %v2206_v37  ;;  %2198 = vmatpush.msra.mxu1 %v2197_v47 }
 0x43a   : > { %2094 = vmatpush.msrb.mxu2 %v1969_v29  ;;  %2118 = vmatpush.msrb.mxu3 %v3607_v19  ;;  %v2225_v19 = vand.u32 4294901760, %v3839_v22  ;;  %v2220_v15 = vsub.f32 %v3829_v39, %v2219_v34 }
 0x43b   : > { %2154 = vmatpush.msra.mxu0 %v3786_v4  ;;  %v2208_v10 = vsub.f32 %v2206_v37, %v2207_v51  ;;  %2204 = vmatpush.msra.mxu1 %v2203_v1  ;;  %v1865_v32 = vld [vmem:[#allocation2 + $0x58] sm:$0xff] }
 0x43c   : > { %2098 = vmatpush.msrb.mxu2 %v1975_v57  ;;  %2120 = vmatpush.msrb.mxu3 %v3669_v33  ;;  %v2215_v33 = vand.u32 4294901760, %v2214_v44  ;;  %v2226_v57 = vsub.f32 %v3839_v22, %v2225_v19  ;;  %v3923_v17 = vand.u32 4294901760, %v1865_v32 }
 0x43d   : > { %2156 = vmatpush.msra.mxu0 %v3794_v2  ;;  %v2209_v53 = vand.u32 4294901760, %v2208_v10  ;;  %2100 = vmatmul.f32.vlgmr.msrb.gmra.mxu2 %v3645_v7 }
 0x43e   : > { %2243 = vmatpush.msra.mxu2 %v3672_v38  ;;  %2122 = vmatpush.msrb.mxu3 %v3635_v63  ;;  %v2221_v63 = vand.u32 4294901760, %v2220_v15  ;;  %v1880_v38 = vld [vmem:[#allocation2 + $0xd0] sm:$0xff] }
 0x43f   : > { %2158 = vmatpush.msra.mxu0 %v3805_v3  ;;  %2210 = vmatpush.msra.mxu1 %v2209_v53 }
 0x440   : > { %2246 = vmatpush.msra.mxu2 %v3692_v0  ;;  %2124 = vmatpush.msrb.mxu3 %v3648_v8  ;;  %v2227_v8 = vand.u32 4294901760, %v2226_v57  ;;  %v3875_v0 = vand.u32 4294901760, %v1880_v38 }
 0x441   : > { %2316 = vmatpush.msrb.mxu0 %v2177_v40  ;;  %2216 = vmatpush.msra.mxu1 %v2215_v33  ;;  %v1874_v40 = vld [vmem:[#allocation2 + $0xa0] sm:$0xff] }
 0x442   : > { %2249 = vmatpush.msra.mxu2 %v3783_v27  ;;  %2126 = vmatpush.msrb.mxu3 %v3721_v43  ;;  %v3888_v43 = vsub.f32 %v1880_v38, %v3875_v0 }
 0x443   : > { %2320 = vmatpush.msrb.mxu0 %v2183_v11  ;;  %2222 = vmatpush.msra.mxu1 %v2221_v63 }
 0x444   : > { %2252 = vmatpush.msra.mxu2 %v3762_v41  ;;  %2128 = vmatpush.msrb.mxu3 %v3687_v21  ;;  %v1877_v21 = vld [vmem:[#allocation2 + $0xb8] sm:$0xff]  ;;  %v2427_v35 = vand.u32 4294901760, %v3888_v43 }
 0x445   : > { %2324 = vmatpush.msrb.mxu0 %v2189_v48  ;;  %2228 = vmatpush.msra.mxu1 %v2227_v8  ;;  %v3883_v11 = vand.u32 4294901760, %v1877_v21 }
 0x446   : > { %2255 = vmatpush.msra.mxu2 %v3776_v16  ;;  %2282 = vmatpush.msra.mxu3 %v3643_v6  ;;  %v3933_v16 = vand.u32 4294901760, %v1862_v46 }
 0x447   : > { %2328 = vmatpush.msrb.mxu0 %v2195_v14  ;;  %2362 = vmatpush.msrb.mxu1 %v3643_v6  ;;  %v3891_v6 = vand.u32 4294901760, %v1874_v40  ;;  %v3897_v29 = vsub.f32 %v1877_v21, %v3883_v11  ;;  %v1856_v14 = vld [vmem:[#allocation2 + $0x10] sm:$0xff]  ;;  %v490_v21 = vld [vmem:[%s364_s10] sm:$0xff] }
 0x448   : > { %2258 = vmatpush.msra.mxu2 %v2206_v37  ;;  %2284 = vmatpush.msra.mxu3 %v3674_v50  ;;  %v3956_v25 = vsub.f32 %v1862_v46, %v3933_v16  ;;  %v3958_v62 = vand.u32 4294901760, %v1856_v14 }
 0x449   : > { %2332 = vmatpush.msrb.mxu0 %v2201_v18  ;;  %2364 = vmatpush.msrb.mxu1 %v3674_v50  ;;  %v1868_v50 = vld [vmem:[#allocation2 + $0x70] sm:$0xff]  ;;  %v3906_v56 = vsub.f32 %v1874_v40, %v3891_v6  ;;  %v2433_v41 = vand.u32 4294901760, %v3897_v29  ;;  %v3944_v18 = vsub.f32 %v1865_v32, %v3923_v17 }
 0x44a   : > { %2261 = vmatpush.msra.mxu2 %v3817_v49  ;;  %2286 = vmatpush.msra.mxu3 %v3772_v5  ;;  %v3908_v59 = vand.u32 4294901760, %v1868_v50  ;;  %v2474_v37 = vsub.f32 %v1856_v14, %v3958_v62 }
 0x44b   : > { %2336 = vmatpush.msrb.mxu0 %v2207_v51  ;;  %2130 = vmatmul.f32.vlgmr.msrb.gmra.mxu3 %v3645_v7  ;;  %v2439_v12 = vand.u32 4294901760, %v3906_v56  ;;  %v2434_v27 = vsub.f32 %v3897_v29, %v2433_v41  ;;  %v2457_v60 = vand.u32 4294901760, %v3944_v18 }
 0x44c   : > { %2264 = vmatpush.msra.mxu2 %v3829_v39  ;;  %2288 = vmatpush.msra.mxu3 %v3738_v9  ;;  %v3928_v58 = vsub.f32 %v1868_v50, %v3908_v59  ;;  %v491_v50 = vld [vmem:[%s370_s14] sm:$0xff] }
 0x44d   : > { %2340 = vmatpush.msrb.mxu0 %v2213_v24  ;;  %2366 = vmatpush.msrb.mxu1 %v3772_v5  ;;  %v1859_v5 = vld [vmem:[#allocation2 + $0x28] sm:$0xff]  ;;  %v2435_v49 = vand.u32 4294901760, %v2434_v27  ;;  %v2458_v24 = vsub.f32 %v3944_v18, %v2457_v60 }
 0x44e   : > { %2267 = vmatpush.msra.mxu2 %v3839_v22  ;;  %2290 = vmatpush.msra.mxu3 %v3748_v55  ;;  %v3946_v42 = vand.u32 4294901760, %v1859_v5  ;;  %v2451_v45 = vand.u32 4294901760, %v3928_v58 }
 0x44f   : > { %2344 = vmatpush.msrb.mxu0 %v2219_v34  ;;  %2368 = vmatpush.msrb.mxu1 %v3738_v9  ;;  %v3915_v9 = vsub.f32 %v1871_v20, %v3899_v26  ;;  %v2475_v34 = vand.u32 4294901760, %v2474_v37  ;;  %v2459_v10 = vand.u32 4294901760, %v2458_v24 }
 0x450   : > { %2392 = vmatpush.msrb.mxu2 %v3875_v0  ;;  %2292 = vmatpush.msra.mxu3 %v3822_v31  ;;  %v2452_v39 = vsub.f32 %v3928_v58, %v2451_v45 }
 0x451   : > { %2348 = vmatpush.msrb.mxu0 %v2225_v19  ;;  %2370 = vmatpush.msrb.mxu1 %v3748_v55  ;;  %v2428_v55 = vsub.f32 %v3888_v43, %v2427_v35  ;;  %v2445_v61 = vand.u32 4294901760, %v3915_v9  ;;  %v2476_v53 = vsub.f32 %v2474_v37, %v2475_v34 }
 0x452   : > { %2394 = vmatpush.msrb.mxu2 %v3883_v11  ;;  %2164 = vmatmul.f32.vlgmr.msra.gmra.mxu0 %v3750_v30  ;;  %v2453_v51 = vand.u32 4294901760, %v2452_v39 }
 0x453   : > { %2294 = vmatpush.msra.mxu3 %v3786_v4  ;;  %2493 = vmatpush.msra.mxu0 %v3888_v43  ;;  %v2429_v48 = vand.u32 4294901760, %v2428_v55  ;;  %v2477_v33 = vand.u32 4294901760, %v2476_v53 }
 0x454   : > { %2372 = vmatpush.msrb.mxu1 %v3822_v31  ;;  %2396 = vmatpush.msrb.mxu2 %v3891_v6  ;;  %v2468_v31 = vsub.f32 %v1859_v5, %v3946_v42 }
 0x455   : > { %2296 = vmatpush.msra.mxu3 %v3794_v2  ;;  %2496 = vmatpush.msra.mxu0 %v3897_v29 }
 0x456   : > { %2270 = vmatmul.f32.vlgmr.msra.gmra.mxu2 %v3680_v52  ;;  %2374 = vmatpush.msrb.mxu1 %v3786_v4  ;;  %v2440_v4 = vsub.f32 %v3906_v56, %v2439_v12  ;;  %v2469_v22 = vand.u32 4294901760, %v2468_v31 }
 0x457   : > { %2398 = vmatpush.msrb.mxu2 %v3899_v26  ;;  %2298 = vmatpush.msra.mxu3 %v3805_v3 }
 0x458   : > { %2499 = vmatpush.msra.mxu0 %v3906_v56  ;;  %2302 = vmatmul.f32.vlgmr.msra.gmra.mxu3 %v3701_v23  ;;  %v2441_v36 = vand.u32 4294901760, %v2440_v4  ;;  %v2470_v44 = vsub.f32 %v2468_v31, %v2469_v22 }
 0x459   : > { %2376 = vmatpush.msrb.mxu1 %v3794_v2  ;;  %2400 = vmatpush.msrb.mxu2 %v3908_v59  ;;  %v2446_v2 = vsub.f32 %v3915_v9, %v2445_v61 }
 0x45a   : > { %2430 = vmatpush.msrb.mxu3 %v2429_v48  ;;  %2502 = vmatpush.msra.mxu0 %v3915_v9  ;;  %v2471_v15 = vand.u32 4294901760, %v2470_v44 }
 0x45b   : > { %2230 = vmatmul.f32.vlgmr.msra.gmra.mxu1 %v3645_v7  ;;  %2402 = vmatpush.msrb.mxu2 %v3923_v17  ;;  %v2447_v47 = vand.u32 4294901760, %v2446_v2 }
 0x45c   : > { %2378 = vmatpush.msrb.mxu1 %v3805_v3  ;;  %2436 = vmatpush.msrb.mxu3 %v2435_v49  ;;  %v2463_v3 = vand.u32 4294901760, %v3956_v25 }
 0x45d   : > { %2505 = vmatpush.msra.mxu0 %v3928_v58  ;;  %2404 = vmatpush.msrb.mxu2 %v3933_v16 }
 0x45e   : > { %2532 = vmatpush.msra.mxu1 %v3875_v0  ;;  %2442 = vmatpush.msrb.mxu3 %v2441_v36  ;;  %v2464_v1 = vsub.f32 %v3956_v25, %v2463_v3 }
 0x45f   : > { %2508 = vmatpush.msra.mxu0 %v3944_v18  ;;  %2406 = vmatpush.msrb.mxu2 %v3946_v42 }
 0x460   : > { %2534 = vmatpush.msra.mxu1 %v3883_v11  ;;  %2448 = vmatpush.msrb.mxu3 %v2447_v47  ;;  %v2465_v19 = vand.u32 4294901760, %v2464_v1 }
 0x461   : > { %2511 = vmatpush.msra.mxu0 %v3956_v25  ;;  %2408 = vmatpush.msrb.mxu2 %v3958_v62 }
 0x462   : > { %2536 = vmatpush.msra.mxu1 %v3891_v6  ;;  %2350 = vmatmul.f32.vlgmr.msrb.gmra.mxu0 %v3645_v7 }
 0x463   : > { %2454 = vmatpush.msrb.mxu3 %v2453_v51  ;;  %2514 = vmatpush.msra.mxu0 %v2468_v31 }
 0x464   : > { %2538 = vmatpush.msra.mxu1 %v3899_v26  ;;  %2566 = vmatpush.msra.mxu2 %v2427_v35 }
 0x465   : > { %2380 = vmatmul.f32.vlgmr.msrb.gmra.mxu1 %v3645_v7  ;;  %2460 = vmatpush.msrb.mxu3 %v2459_v10 }
 0x466   : > { %2517 = vmatpush.msra.mxu0 %v2474_v37  ;;  %2540 = vmatpush.msra.mxu1 %v3908_v59 }
 0x467   : > { %2570 = vmatpush.msra.mxu2 %v2433_v41  ;;  %2466 = vmatpush.msrb.mxu3 %v2465_v19 }
 0x468   : > { %2414 = vmatmul.f32.vlgmr.msrb.gmra.mxu2 %v3750_v30  ;;  %2542 = vmatpush.msra.mxu1 %v3923_v17 }
 0x469   : > { %2574 = vmatpush.msra.mxu2 %v2439_v12  ;;  %2472 = vmatpush.msrb.mxu3 %v2471_v15 }
 0x46a   : > { %2520 = vmatmul.f32.vlgmr.msra.gmra.mxu0 %v3680_v52  ;;  %2544 = vmatpush.msra.mxu1 %v3933_v16 }
 0x46b   : > { %2578 = vmatpush.msra.mxu2 %v2445_v61  ;;  %2478 = vmatpush.msrb.mxu3 %v2477_v33 }
 0x46c   : > { %2546 = vmatpush.msra.mxu1 %v3946_v42  ;;  %2480 = vmatmul.f32.vlgmr.msrb.gmra.mxu3 %v3645_v7 }
 0x46d   : > { %2582 = vmatpush.msra.mxu2 %v2451_v45  ;;  %2612 = vmatpush.msra.mxu3 %v3875_v0 }
 0x46e   : > { %2548 = vmatpush.msra.mxu1 %v3958_v62  ;;  %2673 = vperm.xlu1 %2862, %v490_v21  }
 0x46f   : > { %2586 = vmatpush.msra.mxu2 %v2457_v60  ;;  %2614 = vmatpush.msra.mxu3 %v3883_v11 }
 0x470   : > { %2552 = vmatmul.f32.vlgmr.msra.gmra.mxu1 %v3701_v23 }
 0x471   : > { %2590 = vmatpush.msra.mxu2 %v2463_v3  ;;  %2616 = vmatpush.msra.mxu3 %v3891_v6 }
 0x473   : > { %2594 = vmatpush.msra.mxu2 %v2469_v22  ;;  %2618 = vmatpush.msra.mxu3 %v3899_v26 }
 0x475   : > { %2598 = vmatpush.msra.mxu2 %v2475_v34  ;;  %2620 = vmatpush.msra.mxu3 %v3908_v59 }
 0x476   : > { %2600 = vmatmul.f32.vlgmr.msra.gmra.mxu2 %v3645_v7  ;;  %2681 = vperm.xlu1 %2862, %v491_v50  }
 0x477   : > { %2622 = vmatpush.msra.mxu3 %v3923_v17 }
 0x479   : > { %2624 = vmatpush.msra.mxu3 %v3933_v16 }
 0x47b   : > { %2626 = vmatpush.msra.mxu3 %v3946_v42 }
 0x47d   : > { %2628 = vmatpush.msra.mxu3 %v3958_v62 }
 0x47e   : > { %2630 = vmatmul.f32.vlgmr.msra.gmra.mxu3 %v3645_v7 }
 0x4aa   : > { %v2021_v30 = vpop.f32.mrf.mxu0 }
 0x4ae   : > { %v2053_v57 = vpop.f32.mrf.mxu1 }
 0x4b2   : > { %v1915_v52 = vpop.f32.mrf.mxu2 }
 0x4b8   : > { %v1981_v23 = vpop.f32.mrf.mxu3 }
 0x4b9   : > { %v1982_v43 = vadd.f32 %v1981_v23, %v1915_v52 }
 0x4bb   : > { %v2022_v29 = vadd.f32 %v2021_v30, %v1982_v43 }
 0x4bd   : > { %v2054_v9 = vadd.f32 %v2053_v57, %v2022_v29 }
 0x4c0   : > { %v2101_v63 = vpop.f32.mrf.mxu2 }
 0x4c1   : > { %v2102_v17 = vadd.f32 %v2101_v63, %v2054_v9 }
 0x4ce   : > { %v2131_v8 = vpop.f32.mrf.mxu3 }
 0x4cf   : > { %v2165_v38 = vpop.f32.mrf.mxu0  ;;  %v2132_v16 = vadd.f32 %v2131_v8, %v2102_v17 }
 0x4d1   : > { %v2634_v48 = vsel %vm3508_vm13, %v2132_v16, 0.0 }
 0x4d2   : > { %v2642_v45 = vmul.f32 %v2634_v48, %v2634_v48 }
 0x4d8   : > { %v2231_v0 = vpop.f32.mrf.mxu1 }
 0x4d9   : > { %v2232_v40 = vadd.f32 %v2231_v0, %v2165_v38  ;;  %v2271_v11 = vpop.f32.mrf.mxu2 }
 0x4db   : > { %v2303_v7 = vpop.f32.mrf.mxu3  ;;  %v2272_v6 = vadd.f32 %v2271_v11, %v2232_v40 }
 0x4dd   : > { %v2304_v35 = vadd.f32 %v2303_v7, %v2272_v6 }
 0x4df   : > { %v2351_v20 = vpop.f32.mrf.mxu0 }
 0x4e0   : > { %v2352_v46 = vadd.f32 %v2351_v20, %v2304_v35  ;;  %v2674_v10 = vpop.permute.xlu1 %2673 }
 0x4e2   : > { %v2381_v26 = vpop.f32.mrf.mxu1 }
 0x4e3   : > { %v2382_v12 = vadd.f32 %v2381_v26, %v2352_v46 }
 0x4e5   : > { %v2635_v61 = vsel %vm3504_vm6, %v2382_v12, 0.0 }
 0x4e6   : > { %v2643_v42 = vmul.f32 %v2635_v61, %v2635_v61  ;;  %v2637_v62 = vadd.f32 %v2635_v61, %v2634_v48 }
 0x4e7   : > { %v2521_v41 = vpop.f32.mrf.mxu0 }
 0x4e8   : > { %v2645_v60 = vadd.f32 %v2643_v42, %v2642_v45  ;;  %v2682_v0 = vpop.permute.xlu1 %2681 }
 0x4eb   : > { %v2415_v56 = vpop.f32.mrf.mxu2 }
 0x4ed   : > { %v2553_v58 = vpop.f32.mrf.mxu1 }
 0x4ef   : > { %v2481_v59 = vpop.f32.mrf.mxu3 }
 0x4f0   : > { %v2482_v32 = vadd.f32 %v2481_v59, %v2415_v56 }
 0x4f2   : > { %v2522_v55 = vadd.f32 %v2521_v41, %v2482_v32 }
 0x4f4   : > { %v2554_v5 = vadd.f32 %v2553_v58, %v2522_v55 }
 0x4f9   : > { %v2601_v27 = vpop.f32.mrf.mxu2 }
 0x4fa   : > { %v2602_v14 = vadd.f32 %v2601_v27, %v2554_v5 }
 0x501   : > { %v2631_v18 = vpop.f32.mrf.mxu3 }
 0x502   : > { %v2632_v4 = vadd.f32 %v2631_v18, %v2602_v14 }
 0x504   : > { %v2636_v25 = vsel %vm3516_vm8, %v2632_v4, 0.0 }
 0x505   : > { %v2644_v49 = vmul.f32 %v2636_v25, %v2636_v25  ;;  %v2638_v2 = vsel %vm649_vm3, %v2636_v25, 0.0 }
 0x506   : > { %v2639_v31 = vadd.f32 %v2638_v2, %v2637_v62 }
 0x507   : > { %v2646_v13 = vsel %vm649_vm3, %v2644_v49, 0.0 }
 0x508   : > { %2640 = vadd.xlane.f32.xlu0 %v2639_v31  ;;  %v2647_v36 = vadd.f32 %v2646_v13, %v2645_v60 }
 0x50a   : > { %2648 = vadd.xlane.f32.xlu2 %v2647_v36 }
 0x57b   : > { %v2641_v54 = vpop.xlane.xlu0 %2640 }
 0x57c   : > { %v2650_v39 = vmul.f32 0.00390625, %v2641_v54 }
 0x57d   : > { %v2649_v37 = vpop.xlane.xlu2 %2648 }
 0x57e   : > { %v2651_v3 = vmul.f32 0.00390625, %v2649_v37  ;;  %v2652_v47 = vmul.f32 %v2650_v39, %v2650_v39  ;;  %v2654_v53 = vsub.f32 %v2132_v16, %v2650_v39  ;;  %v2655_v15 = vsub.f32 %v2382_v12, %v2650_v39 }
 0x57f   : > { %v2656_v33 = vsub.f32 %v2632_v4, %v2650_v39 }
 0x580   : > { %v2653_v24 = vsub.f32 %v2651_v3, %v2652_v47 }
 0x582   : > { %v2657_v22 = vadd.f32 1e-05, %v2653_v24 }
 0x584   : > { %2865 = vrsqrt.f32 %v2657_v22  ;;  %vm2664_vm7 = vweird.f32 %v2657_v22 }
 0x58a   : > { %v2866_v28 = vpop.eup %2865 }
 0x58b   : > { %v2659_v51 = vmul.f32 %v2866_v28, %v2657_v22  ;;  %vm2665_vm6 = vweird.f32 %v2866_v28 }
 0x58c   : > { %vm2666_vm9 = vmor %vm2664_vm7, %vm2665_vm6 }
 0x58d   : > { %v2660_v1 = vmul.f32 %v2866_v28, %v2659_v51 }
 0x58f   : > { %v2661_v34 = vmul.f32 0.5, %v2660_v1 }
 0x591   : > { %v2662_v44 = vsub.f32 1.5, %v2661_v34 }
 0x593   : > { %v2663_v19 = vmul.f32 %v2866_v28, %v2662_v44 }
 0x595   : > { %v2667_v52 = vsel %vm2666_vm9, %v2866_v28, %v2663_v19 }
 0x596   : > { %v2668_v23 = vmul.f32 %v2667_v52, %v2654_v53  ;;  %v2669_v30 = vmul.f32 %v2667_v52, %v2655_v15  ;;  %v2670_v57 = vmul.f32 %v2667_v52, %v2656_v33 }
 0x598   : > { %v2676_v63 = vmul.f32 %v2674_v10, %v2668_v23  ;;  %v2677_v8 = vmul.f32 %v2674_v10, %v2669_v30  ;;  %v2678_v38 = vmul.f32 %v2674_v10, %v2670_v57 }
 0x59a   : > { %v2684_v21 = vadd.f32 %v2682_v0, %v2676_v63  ;;  %v2685_v40 = vadd.f32 %v2682_v0, %v2677_v8  ;;  %v2686_v11 = vadd.f32 %v2682_v0, %v2678_v38 }
 0x59c   : > { %v2687_v7 = vmul.f32 0.01, %v2684_v21  ;;  %v2688_v43 = vmul.f32 0.01, %v2685_v40  ;;  %v2689_v20 = vmul.f32 0.01, %v2686_v11 }
 0x59e   : > { %v2690_v6 = vmax.f32 %v2684_v21, %v2687_v7  ;;  %v2691_v50 = vmax.f32 %v2685_v40, %v2688_v43  ;;  %v2692_v29 = vmax.f32 %v2686_v11, %v2689_v20 }
 0x5a0   : > { %2693 = vst [vmem:[%s376_s18] sm:$0xff] %v2690_v6 }
 0x5a1   : > { %2694 = vst [vmem:[%s376_s18 + $0x8] sm:$0xff] %v2691_v50 }
 0x5a2   : > { %2695 = vst.msk [vmem:[%s376_s18 + $0x10] sm:$0xff] %vm649_vm3, %v2692_v29 }
 0x5a3 PF: > { %s19_s29 = sadd.s32 1, %s2873_s29  }
 0x5a4   : > { %p16_p6 = scmp.ge.s32.totalorder %s19_s29, 4  }
 0x5a6   :  { %18 = sbr.rel (!%p16_p6) target bundleno = 2 (0x2), region = 90 }

</bundles_post_ra>
